<compile_context>
chip_gen: v7x
topology: tpu7x:2x2x1
jax: 0.10.0
libtpu: 0.0.40
codegen_flags: <defaults>
</compile_context>

<pallas_src>
import jax
import jax.numpy as jnp
from jax.experimental import pallas as pl
from jax.experimental.pallas import tpu as pltpu

HIDDEN_DIM = 400
LATENT_DIM = 200
NEG_SLOPE = 0.2          # nn.LeakyReLU(0.2) in the reference module

_LANE = 128
_SUBLANE = 8
TILE_B_MAX = 512         # larger tiles amortize the ~0.35us per-grid-step cost


def _round_up(x, m):
    return (x + m - 1) // m * m


HIDDEN_PAD = _round_up(HIDDEN_DIM, _LANE)   # 512
HEAD_WIDTH = 2 * LATENT_DIM                 # 400 = [mean | log_var]
HEAD_PAD = _round_up(HEAD_WIDTH, _LANE)     # 512


def _leaky_relu(x, negative_slope=NEG_SLOPE):
    return jnp.where(x > 0, x, negative_slope * x)


def encoder_kernel(x_ref, w1_ref, b1_ref, w2_ref, b2_ref, wh_ref, bh_ref,
                   out_ref):
    # x_ref : (TILE_B, input_dim) f32, streamed per grid step
    # w*_ref: bf16 weights (VMEM-resident, single-buffered)
    # b*_ref: f32 biases   (VMEM-resident, single-buffered)
    # out   : (TILE_B, HEAD_PAD) f32 fused [mean | log_var | pad] slab
    x = x_ref[...].astype(jnp.bfloat16)                      # bf16 MXU operand

    # FC_input + LeakyReLU(0.2)  (bf16 matmul, f32 accumulate + elementwise)
    h = jnp.dot(x, w1_ref[...], preferred_element_type=jnp.float32) + b1_ref[...]
    h = _leaky_relu(h)

    # FC_input2 + LeakyReLU(0.2)
    h = jnp.dot(h.astype(jnp.bfloat16), w2_ref[...],
                preferred_element_type=jnp.float32) + b2_ref[...]
    h = _leaky_relu(h)

    # Fused FC_mean / FC_var heads: one MXU pass, one unmasked 512-wide store.
    out_ref[...] = (jnp.dot(h.astype(jnp.bfloat16), wh_ref[...],
                            preferred_element_type=jnp.float32)
                    + bh_ref[...]).astype(out_ref.dtype)


def _pick_tile_b(batch):
    """Batch tile: big enough to feed the MXU, >=2 grid steps for megacore."""
    if batch >= 2 * _LANE:
        half = -(-batch // 2)                        # ceil(batch / 2)
        return min(TILE_B_MAX, _round_up(half, _LANE))
    return min(TILE_B_MAX, _round_up(batch, _SUBLANE))


@jax.jit
def encoder_forward_fused(x, packed_params):
    """x: (batch, input_dim) f32 -> fused (batch_pad, HEAD_PAD) slab.

    Columns [0:200) are mean, [200:400) are log_var, [400:512) are padding.
    Downstream consumers can read this slab directly (no slicing copies).
    """
    w1, b1, w2, b2, wh, bh = packed_params
    batch, input_dim = x.shape

    tile_b = _pick_tile_b(batch)
    batch_pad = _round_up(batch, tile_b)
    if batch_pad != batch:
        x = jnp.pad(x, ((0, batch_pad - batch), (0, 0)))   # batch rows only

    grid = (batch_pad // tile_b,)

    def resident(arr):
        # Full-array block, same block every step, single-buffered.
        return pl.BlockSpec(arr.shape, lambda i: (0, 0),
                            pipeline_mode=pl.Buffered(1))

    return pl.pallas_call(
        encoder_kernel,
        out_shape=jax.ShapeDtypeStruct((batch_pad, HEAD_PAD), jnp.float32),
        grid=grid,
        in_specs=[
            pl.BlockSpec((tile_b, input_dim), lambda i: (i, 0)),   # x tile
            resident(w1), resident(b1),
            resident(w2), resident(b2),
            resident(wh), resident(bh),
        ],
        out_specs=pl.BlockSpec((tile_b, HEAD_PAD), lambda i: (i, 0)),
        compiler_params=pltpu.CompilerParams(
            dimension_semantics=("parallel",),
            vmem_limit_bytes=32 * 1024 * 1024,
        ),
    )(x, w1, b1, w2, b2, wh, bh)


def encoder_forward(x, packed_params):
    """PyTorch-parity API: returns (mean, log_var), each (batch, 200)."""
    batch = x.shape[0]
    out = encoder_forward_fused(x, packed_params)
    # TODO(synk): fuse these slices into the downstream reparameterization
    # consumer to avoid the extra HBM pass they cost.
    mean = out[:batch, :LATENT_DIM]
    log_var = out[:batch, LATENT_DIM:HEAD_WIDTH]
    return mean, log_var


def init_params(key, input_dim, hidden_dim, latent_dim):
    """PyTorch-style uniform(-1/sqrt(fan_in), 1/sqrt(fan_in)) init.

    Weights stored as (in_features, out_features); biases as (1, out_features).
    """
    def linear(key, fan_in, fan_out):
        kw, kb = jax.random.split(key)
        bound = 1.0 / jnp.sqrt(fan_in)
        w = jax.random.uniform(kw, (fan_in, fan_out), jnp.float32, -bound, bound)
        b = jax.random.uniform(kb, (1, fan_out), jnp.float32, -bound, bound)
        return w, b

    k1, k2, k3, k4 = jax.random.split(key, 4)
    w1, b1 = linear(k1, input_dim, hidden_dim)
    w2, b2 = linear(k2, hidden_dim, hidden_dim)
    wm, bm = linear(k3, hidden_dim, latent_dim)
    wv, bv = linear(k4, hidden_dim, latent_dim)
    return (w1, b1, w2, b2, wm, bm, wv, bv)


def pack_params(params):
    """Fuse mean/var heads, pad hidden/head dims to 128 multiples, bf16 weights.

    The input-feature (K) dim of w1 is NOT padded, so x needs no feature pad.
    Biases stay f32 (added after the f32 accumulate).
    """
    w1, b1, w2, b2, wm, bm, wv, bv = params

    def pad2(a, rows, cols):
        return jnp.pad(a, ((0, rows - a.shape[0]), (0, cols - a.shape[1])))

    w1p = pad2(w1, w1.shape[0], HIDDEN_PAD).astype(jnp.bfloat16)
    b1p = pad2(b1, 1, HIDDEN_PAD)
    w2p = pad2(w2, HIDDEN_PAD, HIDDEN_PAD).astype(jnp.bfloat16)
    b2p = pad2(b2, 1, HIDDEN_PAD)
    wh = pad2(jnp.concatenate([wm, wv], axis=1), HIDDEN_PAD,
              HEAD_PAD).astype(jnp.bfloat16)
    bh = pad2(jnp.concatenate([bm, bv], axis=1), 1, HEAD_PAD)
    return (w1p, b1p, w2p, b2p, wh, bh)


def reference_forward_f32(x, params):
    w1, b1, w2, b2, wm, bm, wv, bv = params
    h = _leaky_relu(x @ w1 + b1)
    h = _leaky_relu(h @ w2 + b2)
    return h @ wm + bm, h @ wv + bv


def reference_forward_bf16(x, params):
    """Same dtype policy as the kernel: bf16 operands, f32 accumulate."""
    w1, b1, w2, b2, wm, bm, wv, bv = params

    def mm(a, w):
        return jnp.dot(a.astype(jnp.bfloat16), w.astype(jnp.bfloat16),
                       preferred_element_type=jnp.float32)

    h = _leaky_relu(mm(x, w1) + b1)
    h = _leaky_relu(mm(h, w2) + b2)
    return mm(h, wm) + bm, mm(h, wv) + bv


if __name__ == "__main__":
    batch = 8
    input_dim = 256  # flattened input features, like the VAE's x

    key = jax.random.PRNGKey(0)
    key_x, key_p = jax.random.split(key)
    x = jax.random.normal(key_x, (batch, input_dim), dtype=jnp.float32)
    params = init_params(key_p, input_dim, HIDDEN_DIM, LATENT_DIM)
    packed = pack_params(params)

    mean, log_var = encoder_forward(x, packed)
    jax.block_until_ready((mean, log_var))

    assert mean.shape == (batch, LATENT_DIM) and log_var.shape == (batch, LATENT_DIM)

    # Tight check vs a pure-JAX reference using the same bf16-operand policy.
    ref_mean_bf, ref_lv_bf = reference_forward_bf16(x, params)
    assert jnp.allclose(mean, ref_mean_bf, atol=5e-3, rtol=5e-3)
    assert jnp.allclose(log_var, ref_lv_bf, atol=5e-3, rtol=5e-3)

    # Looser check vs the full-f32 reference (bounds the bf16 weight quantization).
    ref_mean, ref_log_var = reference_forward_f32(x, params)
    assert jnp.allclose(mean, ref_mean, atol=5e-2, rtol=5e-2)
    assert jnp.allclose(log_var, ref_log_var, atol=5e-2, rtol=5e-2)

    print("KERNEL_OK")
</pallas_src>

<mosaic_0001>
module attributes {stable_mosaic.version = 11 : i64} {
  func.func @encoder_kernel(%arg0: i32, %arg1: memref<8x256xf32, #tpu.memory_space<vmem>>, %arg2: memref<256x512xbf16, #tpu.memory_space<vmem>>, %arg3: memref<1x512xf32, #tpu.memory_space<vmem>>, %arg4: memref<512x512xbf16, #tpu.memory_space<vmem>>, %arg5: memref<1x512xf32, #tpu.memory_space<vmem>>, %arg6: memref<512x512xbf16, #tpu.memory_space<vmem>>, %arg7: memref<1x512xf32, #tpu.memory_space<vmem>>, %arg8: memref<8x512xf32, #tpu.memory_space<vmem>>) attributes {dimension_semantics = [#tpu.dimension_semantics<parallel>], iteration_bounds = array<i64: 1>, scalar_prefetch = 0 : i64, scratch_operands = 0 : i64, tpu.core_type = #tpu.core_type<tc>, window_params = [{transform_indices = @transform_0, window_bounds = array<i64: 8, 256>}, {pipeline_mode = #tpu.pipeline_mode<synchronous>, transform_indices = @transform_1, window_bounds = array<i64: 256, 512>}, {pipeline_mode = #tpu.pipeline_mode<synchronous>, transform_indices = @transform_2, window_bounds = array<i64: 1, 512>}, {pipeline_mode = #tpu.pipeline_mode<synchronous>, transform_indices = @transform_3, window_bounds = array<i64: 512, 512>}, {pipeline_mode = #tpu.pipeline_mode<synchronous>, transform_indices = @transform_4, window_bounds = array<i64: 1, 512>}, {pipeline_mode = #tpu.pipeline_mode<synchronous>, transform_indices = @transform_5, window_bounds = array<i64: 512, 512>}, {pipeline_mode = #tpu.pipeline_mode<synchronous>, transform_indices = @transform_6, window_bounds = array<i64: 1, 512>}, {transform_indices = @transform_7, window_bounds = array<i64: 8, 512>}]} {
    %c0 = arith.constant 0 : index
    %c0_0 = arith.constant 0 : index
    %0 = vector.load %arg1[%c0, %c0_0] : memref<8x256xf32, #tpu.memory_space<vmem>>, vector<8x256xf32>
    %1 = arith.truncf %0 : vector<8x256xf32> to vector<8x256xbf16>
    %c0_1 = arith.constant 0 : index
    %c0_2 = arith.constant 0 : index
    %2 = vector.load %arg2[%c0_1, %c0_2] : memref<256x512xbf16, #tpu.memory_space<vmem>>, vector<256x512xbf16>
    %cst = arith.constant dense<0.000000e+00> : vector<8x512xf32>
    %3 = tpu.matmul %1, %2, %cst {dimension_numbers = #tpu.dot_dimension_numbers<[1], [0], [0], [1], [0, 0, 1, 1], [], []>} : vector<8x256xbf16>, vector<256x512xbf16>, vector<8x512xf32> -> vector<8x512xf32>
    %c0_3 = arith.constant 0 : index
    %c0_4 = arith.constant 0 : index
    %4 = vector.load %arg3[%c0_3, %c0_4] : memref<1x512xf32, #tpu.memory_space<vmem>>, vector<1x512xf32>
    %5 = vector.broadcast %4 : vector<1x512xf32> to vector<8x512xf32>
    %6 = arith.addf %3, %5 : vector<8x512xf32>
    %cst_5 = arith.constant 0.000000e+00 : f32
    %7 = vector.broadcast %cst_5 : f32 to vector<8x512xf32>
    %8 = arith.cmpf ogt, %6, %7 : vector<8x512xf32>
    %cst_6 = arith.constant 2.000000e-01 : f32
    %9 = vector.broadcast %cst_6 : f32 to vector<8x512xf32>
    %10 = arith.mulf %9, %6 : vector<8x512xf32>
    %11 = arith.select %8, %6, %10 : vector<8x512xi1>, vector<8x512xf32>
    %12 = arith.truncf %11 : vector<8x512xf32> to vector<8x512xbf16>
    %c0_7 = arith.constant 0 : index
    %c0_8 = arith.constant 0 : index
    %13 = vector.load %arg4[%c0_7, %c0_8] : memref<512x512xbf16, #tpu.memory_space<vmem>>, vector<512x512xbf16>
    %cst_9 = arith.constant dense<0.000000e+00> : vector<8x512xf32>
    %14 = tpu.matmul %12, %13, %cst_9 {dimension_numbers = #tpu.dot_dimension_numbers<[1], [0], [0], [1], [0, 0, 1, 1], [], []>} : vector<8x512xbf16>, vector<512x512xbf16>, vector<8x512xf32> -> vector<8x512xf32>
    %c0_10 = arith.constant 0 : index
    %c0_11 = arith.constant 0 : index
    %15 = vector.load %arg5[%c0_10, %c0_11] : memref<1x512xf32, #tpu.memory_space<vmem>>, vector<1x512xf32>
    %16 = vector.broadcast %15 : vector<1x512xf32> to vector<8x512xf32>
    %17 = arith.addf %14, %16 : vector<8x512xf32>
    %cst_12 = arith.constant 0.000000e+00 : f32
    %18 = vector.broadcast %cst_12 : f32 to vector<8x512xf32>
    %19 = arith.cmpf ogt, %17, %18 : vector<8x512xf32>
    %cst_13 = arith.constant 2.000000e-01 : f32
    %20 = vector.broadcast %cst_13 : f32 to vector<8x512xf32>
    %21 = arith.mulf %20, %17 : vector<8x512xf32>
    %22 = arith.select %19, %17, %21 : vector<8x512xi1>, vector<8x512xf32>
    %23 = arith.truncf %22 : vector<8x512xf32> to vector<8x512xbf16>
    %c0_14 = arith.constant 0 : index
    %c0_15 = arith.constant 0 : index
    %24 = vector.load %arg6[%c0_14, %c0_15] : memref<512x512xbf16, #tpu.memory_space<vmem>>, vector<512x512xbf16>
    %cst_16 = arith.constant dense<0.000000e+00> : vector<8x512xf32>
    %25 = tpu.matmul %23, %24, %cst_16 {dimension_numbers = #tpu.dot_dimension_numbers<[1], [0], [0], [1], [0, 0, 1, 1], [], []>} : vector<8x512xbf16>, vector<512x512xbf16>, vector<8x512xf32> -> vector<8x512xf32>
    %c0_17 = arith.constant 0 : index
    %c0_18 = arith.constant 0 : index
    %26 = vector.load %arg7[%c0_17, %c0_18] : memref<1x512xf32, #tpu.memory_space<vmem>>, vector<1x512xf32>
    %27 = vector.broadcast %26 : vector<1x512xf32> to vector<8x512xf32>
    %28 = arith.addf %25, %27 : vector<8x512xf32>
    %c0_19 = arith.constant 0 : index
    %c0_20 = arith.constant 0 : index
    %29 = vector.load %arg8[%c0_19, %c0_20] : memref<8x512xf32, #tpu.memory_space<vmem>>, vector<8x512xf32>
    tpu.vector_store %arg8[%c0_19, %c0_20], %28 {strides = array<i32>} : memref<8x512xf32, #tpu.memory_space<vmem>>, vector<8x512xf32>,
    return
  }
  func.func @transform_0(%arg0: i32) -> (i32, i32) {
    %c0_i32 = arith.constant 0 : i32
    %c0_i32_0 = arith.constant 0 : i32
    return %arg0, %c0_i32 : i32, i32
  }
  func.func @transform_1(%arg0: i32) -> (i32, i32) {
    %c0_i32 = arith.constant 0 : i32
    %c0_i32_0 = arith.constant 0 : i32
    %c0_i32_1 = arith.constant 0 : i32
    return %c0_i32, %c0_i32_0 : i32, i32
  }
  func.func @transform_2(%arg0: i32) -> (i32, i32) {
    %c0_i32 = arith.constant 0 : i32
    %c0_i32_0 = arith.constant 0 : i32
    %c0_i32_1 = arith.constant 0 : i32
    return %c0_i32, %c0_i32_0 : i32, i32
  }
  func.func @transform_3(%arg0: i32) -> (i32, i32) {
    %c0_i32 = arith.constant 0 : i32
    %c0_i32_0 = arith.constant 0 : i32
    %c0_i32_1 = arith.constant 0 : i32
    return %c0_i32, %c0_i32_0 : i32, i32
  }
  func.func @transform_4(%arg0: i32) -> (i32, i32) {
    %c0_i32 = arith.constant 0 : i32
    %c0_i32_0 = arith.constant 0 : i32
    %c0_i32_1 = arith.constant 0 : i32
    return %c0_i32, %c0_i32_0 : i32, i32
  }
  func.func @transform_5(%arg0: i32) -> (i32, i32) {
    %c0_i32 = arith.constant 0 : i32
    %c0_i32_0 = arith.constant 0 : i32
    %c0_i32_1 = arith.constant 0 : i32
    return %c0_i32, %c0_i32_0 : i32, i32
  }
  func.func @transform_6(%arg0: i32) -> (i32, i32) {
    %c0_i32 = arith.constant 0 : i32
    %c0_i32_0 = arith.constant 0 : i32
    %c0_i32_1 = arith.constant 0 : i32
    return %c0_i32, %c0_i32_0 : i32, i32
  }
  func.func @transform_7(%arg0: i32) -> (i32, i32) {
    %c0_i32 = arith.constant 0 : i32
    %c0_i32_0 = arith.constant 0 : i32
    return %arg0, %c0_i32 : i32, i32
  }
}

</mosaic_0001>

<bundles_post_ra>
// kernel: encoder_forward_fused.1
= control target key start
LH: loop header
LB: loop body
LE: loop exit
PB: predicated region body
PF: predicated region fallthrough
CT: control target
= control target key end

     0   :  { %12 = vsyncpa [#allocation3], 0  ;;  %s3651_s0 = inlined_call_operand.hbm [shape: f32[8,256], index: 0, kind: input, shape index: {}]   ;;  %s3652_s1 = inlined_call_operand.hbm [shape: bf16[256,512], index: 1, kind: input, shape index: {}]   ;;  %s3653_s2 = inlined_call_operand.vmem [shape: f32[1,512], index: 2, kind: input, shape index: {}]   ;;  %s3654_s3 = inlined_call_operand.hbm [shape: bf16[512,512], index: 3, kind: input, shape index: {}]   ;;  %s3655_s4 = inlined_call_operand.vmem [shape: f32[1,512], index: 4, kind: input, shape index: {}]   ;;  %s3656_s5 = inlined_call_operand.hbm [shape: bf16[512,512], index: 5, kind: input, shape index: {}]   ;;  %s3657_s6 = inlined_call_operand.vmem [shape: f32[1,512], index: 6, kind: input, shape index: {}]   ;;  %s3658_s7 = inlined_call_operand.hbm [shape: f32[8,512], index: 7, kind: output, shape index: {}]  }
   0x1   :  { %13 = vsyncpa [#allocation6], 0 }
   0x2   :  { %14 = vsyncpa [#allocation9], 0 }
   0x3   :  { %15 = vsyncpa [#allocation4], 0  ;;  %s3482_s24 = smov [#allocation5]   ;;  %s3364_s28 = scalar_lea.hbm %s3652_s1, 8192 }
   0x4   :  { %s31_s25 = sshll.u32 %s3482_s24, 4  ;;  %p3365_p0 = scmp.ne.s32.totalorder %s3652_s1, %s3364_s28  ;;  %s32_s25 = int_to_ptr.vmem [resolvable:$true] %s31_s25 }
   0x5   :  { %p3368_p1 = scmp.lt.u32.totalorder %s3364_s28, %s3652_s1 }
   0x7   :  { %p3370_p2 = pnand %p3368_p1, %p3365_p0 }
   0x9   :  { %3373 = shalt.err (!%p3370_p2)
}
   0xa   :  { %s3374_s10 = scalar_lea.vmem %s32_s25, 8192  ;;  %p3379_p4 = scmp.lt.s32.totalorder %s32_s25, %s32_s25 }
   0xb   :  { %p3375_p3 = scmp.ne.s32.totalorder %s32_s25, %s3374_s10  ;;  %p3380_p5 = scmp.lt.s32.totalorder %s3374_s10, %s3374_s10 }
   0xd   :  { %p3381_p6 = por %p3380_p5, %p3379_p4 }
   0xf   :  { %p3382_p7 = pnand %p3381_p6, %p3375_p3 }
  0x11   :  { %3385 = shalt.err (!%p3382_p7)
}
  0x12   :  { %s3483_s11 = smov 256   ;;  %s3484_s12 = smov 16  }
  0x13   :  { %37 = dma.hbm_to_vmem [thread:$0]  %s3652_s1, 8192, %s32_s25, [#allocation6], %s3483_s11, %s3483_s11, %s3484_s12  }
  0x14   :  { %s3485_s15 = smov [#allocation2]   ;;  %s3486_s17 = smov [#allocation7]  }
  0x15   :  { %s22_s16 = sshll.u32 %s3485_s15, 4  ;;  %s45_s18 = sshll.u32 %s3486_s17, 4  ;;  %s23_s16 = int_to_ptr.vmem [resolvable:$true] %s22_s16  ;;  %s46_s18 = int_to_ptr.vmem [resolvable:$true] %s45_s18 }
  0x16   :  { %s3386_s21 = scalar_lea.hbm %s3651_s0, 256 }
  0x17   :  { %p3387_p8 = scmp.ne.s32.totalorder %s3651_s0, %s3386_s21  ;;  %p3390_p9 = scmp.lt.u32.totalorder %s3386_s21, %s3651_s0 }
  0x19   :  { %p3392_p10 = pnand %p3390_p9, %p3387_p8 }
  0x1b   :  { %3395 = shalt.err (!%p3392_p10)
}
  0x1c   :  { %s3396_s1 = scalar_lea.vmem %s23_s16, 256  ;;  %p3401_p12 = scmp.lt.s32.totalorder %s23_s16, %s23_s16 }
  0x1d   :  { %p3397_p11 = scmp.ne.s32.totalorder %s23_s16, %s3396_s1  ;;  %p3402_p13 = scmp.lt.s32.totalorder %s3396_s1, %s3396_s1 }
  0x1f   :  { %p3403_p0 = por %p3402_p13, %p3401_p12 }
  0x21   :  { %p3404_p1 = pnand %p3403_p0, %p3397_p11 }
  0x23   :  { %3407 = shalt.err (!%p3404_p1)
}
  0x24   :  { %25 = dma.hbm_to_vmem [thread:$0]  %s3651_s0, 256, %s23_s16, [#allocation3]  }
  0x25   :  { %s3408_s30 = scalar_lea.hbm %s3654_s3, 16384 }
  0x26   :  { %p3409_p2 = scmp.ne.s32.totalorder %s3654_s3, %s3408_s30  ;;  %p3412_p3 = scmp.lt.u32.totalorder %s3408_s30, %s3654_s3 }
  0x28   :  { %p3414_p4 = pnand %p3412_p3, %p3409_p2 }
  0x2a   :  { %3417 = shalt.err (!%p3414_p4)
}
  0x2b   :  { %s3418_s14 = scalar_lea.vmem %s46_s18, 16384  ;;  %p3423_p6 = scmp.lt.s32.totalorder %s46_s18, %s46_s18 }
  0x2c   :  { %p3419_p5 = scmp.ne.s32.totalorder %s46_s18, %s3418_s14  ;;  %p3424_p7 = scmp.lt.s32.totalorder %s3418_s14, %s3418_s14 }
  0x2e   :  { %p3425_p8 = por %p3424_p7, %p3423_p6 }
  0x30   :  { %p3426_p9 = pnand %p3425_p8, %p3419_p5 }
  0x32   :  { %3429 = shalt.err (!%p3426_p9)
}
  0x33   :  { %51 = dma.hbm_to_vmem [thread:$0]  %s3654_s3, 16384, %s46_s18, [#allocation6], %s3483_s11, %s3483_s11, %s3484_s12  }
  0x34   :  { %s3487_s16 = smov [#allocation8]   ;;  %s3430_s21 = scalar_lea.hbm %s3656_s5, 16384 }
  0x35   :  { %s59_s17 = sshll.u32 %s3487_s16, 4  ;;  %p3431_p10 = scmp.ne.s32.totalorder %s3656_s5, %s3430_s21  ;;  %s60_s17 = int_to_ptr.vmem [resolvable:$true] %s59_s17 }
  0x36   :  { %p3434_p11 = scmp.lt.u32.totalorder %s3430_s21, %s3656_s5 }
  0x38   :  { %p3436_p12 = pnand %p3434_p11, %p3431_p10 }
  0x3a   :  { %3439 = shalt.err (!%p3436_p12)
}
  0x3b   :  { %s3440_s1 = scalar_lea.vmem %s60_s17, 16384  ;;  %p3445_p0 = scmp.lt.s32.totalorder %s60_s17, %s60_s17 }
  0x3c   :  { %p3441_p13 = scmp.ne.s32.totalorder %s60_s17, %s3440_s1  ;;  %p3446_p1 = scmp.lt.s32.totalorder %s3440_s1, %s3440_s1 }
  0x3e   :  { %p3447_p2 = por %p3446_p1, %p3445_p0 }
  0x40   :  { %p3448_p3 = pnand %p3447_p2, %p3441_p13 }
  0x42   :  { %3451 = shalt.err (!%p3448_p3)
}
  0x43   :  { %65 = dma.hbm_to_vmem [thread:$0]  %s3656_s5, 16384, %s60_s17, [#allocation9], %s3483_s11, %s3483_s11, %s3484_s12  }
  0x44   :  { %3474 = dma.done.wait [#allocation3], 256  }
  0x45   :  { %3475 = vsyncadd [#allocation3], 4294967040 }
  0x46   :  { %3476 = dma.done.wait [#allocation6], 24576  }
  0x47   :  { %3477 = vsyncadd [#allocation6], 4294942720 }
  0x48   :  { %3478 = dma.done.wait [#allocation9], 16384  }
  0x49   :  { %3479 = vsyncadd [#allocation9], 4294950912  ;;  %v2884_v0 = vld [vmem:[#allocation5 + $0x4] ss:$16 sps:$4 sm:$0xff]   ;;  %v2886_v1 = vld [vmem:[#allocation5] ss:$16 sps:$4 sm:$0xff]  }
  0x4a   :  { %490 = vmatprep.subr.bf16.mxu0 %v2884_v0  ;;  %v2887_v2 = vld [vmem:[#allocation5 + $0x24] ss:$16 sps:$4 sm:$0xff]   ;;  %v2889_v3 = vld [vmem:[#allocation5 + $0x20] ss:$16 sps:$4 sm:$0xff]   ;;  %v2931_v13 = vld [vmem:[#allocation5 + $0xc] ss:$16 sps:$4 sm:$0xff]  }
  0x4b   :  { %491 = vmatpush1.bf16.msra.mxu0 %v2886_v1  ;;  %v2890_v4 = vld [vmem:[#allocation5 + $0x44] ss:$16 sps:$4 sm:$0xff]   ;;  %v2892_v5 = vld [vmem:[#allocation5 + $0x40] ss:$16 sps:$4 sm:$0xff]   ;;  %v2934_v15 = vld [vmem:[#allocation5 + $0x8] ss:$16 sps:$4 sm:$0xff]   ;;  %531 = vmatprep.subr.bf16.mxu1 %v2931_v13 }
  0x4c   :  { %492 = vmatprep.subr.bf16.mxu0 %v2887_v2  ;;  %v2893_v6 = vld [vmem:[#allocation5 + $0x64] ss:$16 sps:$4 sm:$0xff]   ;;  %v2895_v7 = vld [vmem:[#allocation5 + $0x60] ss:$16 sps:$4 sm:$0xff]   ;;  %v81_v16 = vld [vmem:[#allocation2 + $0x8] sm:$0xff]  ;;  %532 = vmatpush1.bf16.msra.mxu1 %v2934_v15  ;;  %s3488_s27 = smov [#allocation10]  }
  0x4d   :  { %v2896_v8 = vld [vmem:[#allocation5 + $0x84] ss:$16 sps:$4 sm:$0xff]   ;;  %v2898_v9 = vld [vmem:[#allocation5 + $0x80] ss:$16 sps:$4 sm:$0xff]   ;;  %v83_v18 = vpack.c.bf16 %v81_v16, %v81_v16  ;;  %v2935_v19 = vld [vmem:[#allocation5 + $0x2c] ss:$16 sps:$4 sm:$0xff]  }
  0x4e   :  { %v2899_v10 = vld [vmem:[#allocation5 + $0xa4] ss:$16 sps:$4 sm:$0xff]   ;;  %v2901_v11 = vld [vmem:[#allocation5 + $0xa0] ss:$16 sps:$4 sm:$0xff]   ;;  %v2937_v20 = vld [vmem:[#allocation5 + $0x28] ss:$16 sps:$4 sm:$0xff]   ;;  %533 = vmatprep.subr.bf16.mxu1 %v2935_v19 }
  0x4f   :  { %493 = vmatpush1.bf16.msra.mxu0 %v2889_v3  ;;  %v2902_v12 = vld [vmem:[#allocation5 + $0xc4] ss:$16 sps:$4 sm:$0xff]   ;;  %v2904_v14 = vld [vmem:[#allocation5 + $0xc0] ss:$16 sps:$4 sm:$0xff]   ;;  %522 = vmatprep.mubr.bf16.mxu0 %v83_v18  ;;  %v2938_v21 = vld [vmem:[#allocation5 + $0x4c] ss:$16 sps:$4 sm:$0xff]  }
  0x50   :  { %494 = vmatprep.subr.bf16.mxu0 %v2890_v4  ;;  %v2905_v17 = vld [vmem:[#allocation5 + $0xe4] ss:$16 sps:$4 sm:$0xff]   ;;  %563 = vmatprep.mubr.bf16.mxu1 %v83_v18  ;;  %v2907_v22 = vld [vmem:[#allocation5 + $0xe0] ss:$16 sps:$4 sm:$0xff]   ;;  %v2940_v24 = vld [vmem:[#allocation5 + $0x48] ss:$16 sps:$4 sm:$0xff]  }
  0x51   :  { %v2908_v23 = vld [vmem:[#allocation5 + $0x104] ss:$16 sps:$4 sm:$0xff]   ;;  %534 = vmatpush1.bf16.msra.mxu1 %v2937_v20  ;;  %v2941_v25 = vld [vmem:[#allocation5 + $0x6c] ss:$16 sps:$4 sm:$0xff]   ;;  %v2910_v26 = vld [vmem:[#allocation5 + $0x100] ss:$16 sps:$4 sm:$0xff]  }
  0x52   :  { %535 = vmatprep.subr.bf16.mxu1 %v2938_v21  ;;  %v2911_v27 = vld [vmem:[#allocation5 + $0x124] ss:$16 sps:$4 sm:$0xff]   ;;  %v2943_v28 = vld [vmem:[#allocation5 + $0x68] ss:$16 sps:$4 sm:$0xff]   ;;  %v2944_v29 = vld [vmem:[#allocation5 + $0x8c] ss:$16 sps:$4 sm:$0xff]  }
  0x53   :  { %495 = vmatpush1.bf16.msra.mxu0 %v2892_v5  ;;  %v2913_v30 = vld [vmem:[#allocation5 + $0x120] ss:$16 sps:$4 sm:$0xff]   ;;  %v2914_v31 = vld [vmem:[#allocation5 + $0x144] ss:$16 sps:$4 sm:$0xff]   ;;  %v2946_v32 = vld [vmem:[#allocation5 + $0x88] ss:$16 sps:$4 sm:$0xff]  }
  0x54   :  { %496 = vmatprep.subr.bf16.mxu0 %v2893_v6  ;;  %v2947_v33 = vld [vmem:[#allocation5 + $0xac] ss:$16 sps:$4 sm:$0xff]   ;;  %v2916_v34 = vld [vmem:[#allocation5 + $0x140] ss:$16 sps:$4 sm:$0xff]   ;;  %v2917_v35 = vld [vmem:[#allocation5 + $0x164] ss:$16 sps:$4 sm:$0xff]  }
  0x55   :  { %536 = vmatpush1.bf16.msra.mxu1 %v2940_v24  ;;  %v2949_v36 = vld [vmem:[#allocation5 + $0xa8] ss:$16 sps:$4 sm:$0xff]   ;;  %v2950_v37 = vld [vmem:[#allocation5 + $0xcc] ss:$16 sps:$4 sm:$0xff]   ;;  %v2919_v38 = vld [vmem:[#allocation5 + $0x160] ss:$16 sps:$4 sm:$0xff]  }
  0x56   :  { %537 = vmatprep.subr.bf16.mxu1 %v2941_v25  ;;  %v2920_v39 = vld [vmem:[#allocation5 + $0x184] ss:$16 sps:$4 sm:$0xff]   ;;  %v2952_v40 = vld [vmem:[#allocation5 + $0xc8] ss:$16 sps:$4 sm:$0xff]   ;;  %v2953_v41 = vld [vmem:[#allocation5 + $0xec] ss:$16 sps:$4 sm:$0xff]  }
  0x57   :  { %497 = vmatpush1.bf16.msra.mxu0 %v2895_v7  ;;  %v2922_v42 = vld [vmem:[#allocation5 + $0x180] ss:$16 sps:$4 sm:$0xff]   ;;  %v2923_v43 = vld [vmem:[#allocation5 + $0x1a4] ss:$16 sps:$4 sm:$0xff]   ;;  %v2955_v44 = vld [vmem:[#allocation5 + $0xe8] ss:$16 sps:$4 sm:$0xff]  }
  0x58   :  { %498 = vmatprep.subr.bf16.mxu0 %v2896_v8  ;;  %v2956_v45 = vld [vmem:[#allocation5 + $0x10c] ss:$16 sps:$4 sm:$0xff]   ;;  %v2925_v46 = vld [vmem:[#allocation5 + $0x1a0] ss:$16 sps:$4 sm:$0xff]   ;;  %v2926_v47 = vld [vmem:[#allocation5 + $0x1c4] ss:$16 sps:$4 sm:$0xff]  }
  0x59   :  { %538 = vmatpush1.bf16.msra.mxu1 %v2943_v28  ;;  %v2958_v48 = vld [vmem:[#allocation5 + $0x108] ss:$16 sps:$4 sm:$0xff]   ;;  %v2959_v49 = vld [vmem:[#allocation5 + $0x12c] ss:$16 sps:$4 sm:$0xff]   ;;  %v2928_v50 = vld [vmem:[#allocation5 + $0x1c0] ss:$16 sps:$4 sm:$0xff]  }
  0x5a   :  { %539 = vmatprep.subr.bf16.mxu1 %v2944_v29  ;;  %v2929_v51 = vld [vmem:[#allocation5 + $0x1e4] ss:$16 sps:$4 sm:$0xff]   ;;  %v2961_v52 = vld [vmem:[#allocation5 + $0x128] ss:$16 sps:$4 sm:$0xff]   ;;  %v2962_v53 = vld [vmem:[#allocation5 + $0x14c] ss:$16 sps:$4 sm:$0xff]  }
  0x5b   :  { %499 = vmatpush1.bf16.msra.mxu0 %v2898_v9  ;;  %v2933_v54 = vld [vmem:[#allocation5 + $0x1e0] ss:$16 sps:$4 sm:$0xff]   ;;  %v2964_v56 = vld [vmem:[#allocation5 + $0x148] ss:$16 sps:$4 sm:$0xff]   ;;  %v2982_v57 = vld [vmem:[#allocation7 + $0x4] ss:$16 sps:$4 sm:$0xff]  }
  0x5c   :  { %500 = vmatprep.subr.bf16.mxu0 %v2899_v10  ;;  %v80_v55 = vld [vmem:[#allocation2] sm:$0xff]  ;;  %v2965_v58 = vld [vmem:[#allocation5 + $0x16c] ss:$16 sps:$4 sm:$0xff]   ;;  %v2967_v61 = vld [vmem:[#allocation5 + $0x168] ss:$16 sps:$4 sm:$0xff]   ;;  %s2522_s28 = sshll.u32 %s3488_s27, 4  ;;  %s2523_s28 = int_to_ptr.vmem [resolvable:$true] %s2522_s28 }
  0x5d   :  { %540 = vmatpush1.bf16.msra.mxu1 %v2946_v32  ;;  %v82_v59 = vpack.c.bf16 %v80_v55, %v80_v55  ;;  %v2980_v60 = vld [vmem:[#allocation7] ss:$16 sps:$4 sm:$0xff]   ;;  %v2988_v62 = vld [vmem:[#allocation7 + $0x24] ss:$16 sps:$4 sm:$0xff]   ;;  %v2968_v63 = vld [vmem:[#allocation5 + $0x18c] ss:$16 sps:$4 sm:$0xff]   ;;  %p3457_p5 = scmp.lt.s32.totalorder %s2523_s28, %s2523_s28 }
  0x5e   :  { %541 = vmatprep.subr.bf16.mxu1 %v2947_v33  ;;  %v2986_v0 = vld [vmem:[#allocation7 + $0x20] ss:$16 sps:$4 sm:$0xff]   ;;  %v2970_v1 = vld [vmem:[#allocation5 + $0x188] ss:$16 sps:$4 sm:$0xff]   ;;  %v2994_v2 = vld [vmem:[#allocation7 + $0x44] ss:$16 sps:$4 sm:$0xff]  }
  0x5f   :  { %501 = vmatpush1.bf16.msra.mxu0 %v2901_v11  ;;  %v2971_v3 = vld [vmem:[#allocation5 + $0x1ac] ss:$16 sps:$4 sm:$0xff]   ;;  %v2992_v4 = vld [vmem:[#allocation7 + $0x40] ss:$16 sps:$4 sm:$0xff]   ;;  %v2973_v5 = vld [vmem:[#allocation5 + $0x1a8] ss:$16 sps:$4 sm:$0xff]  }
  0x60   :  { %502 = vmatprep.subr.bf16.mxu0 %v2902_v12  ;;  %v3000_v6 = vld [vmem:[#allocation7 + $0x64] ss:$16 sps:$4 sm:$0xff]   ;;  %v2974_v7 = vld [vmem:[#allocation5 + $0x1cc] ss:$16 sps:$4 sm:$0xff]   ;;  %v2998_v8 = vld [vmem:[#allocation7 + $0x60] ss:$16 sps:$4 sm:$0xff]  }
  0x61   :  { %542 = vmatpush1.bf16.msra.mxu1 %v2949_v36  ;;  %v2976_v9 = vld [vmem:[#allocation5 + $0x1c8] ss:$16 sps:$4 sm:$0xff]   ;;  %v3006_v10 = vld [vmem:[#allocation7 + $0x84] ss:$16 sps:$4 sm:$0xff]   ;;  %v2977_v11 = vld [vmem:[#allocation5 + $0x1ec] ss:$16 sps:$4 sm:$0xff]  }
  0x62   :  { %543 = vmatprep.subr.bf16.mxu1 %v2950_v37  ;;  %v3004_v12 = vld [vmem:[#allocation7 + $0x80] ss:$16 sps:$4 sm:$0xff]   ;;  %v2979_v13 = vld [vmem:[#allocation5 + $0x1e8] ss:$16 sps:$4 sm:$0xff]   ;;  %v3012_v15 = vld [vmem:[#allocation7 + $0xa4] ss:$16 sps:$4 sm:$0xff]  }
  0x63   :  { %503 = vmatpush1.bf16.msra.mxu0 %v2904_v14  ;;  %v2985_v14 = vld [vmem:[#allocation7 + $0xc] ss:$16 sps:$4 sm:$0xff]   ;;  %v3010_v16 = vld [vmem:[#allocation7 + $0xa0] ss:$16 sps:$4 sm:$0xff]   ;;  %v3018_v18 = vld [vmem:[#allocation7 + $0xc4] ss:$16 sps:$4 sm:$0xff]  }
  0x64   :  { %504 = vmatprep.subr.bf16.mxu0 %v2905_v17  ;;  %v2983_v17 = vld [vmem:[#allocation7 + $0x8] ss:$16 sps:$4 sm:$0xff]   ;;  %v2991_v19 = vld [vmem:[#allocation7 + $0x2c] ss:$16 sps:$4 sm:$0xff]   ;;  %v3016_v20 = vld [vmem:[#allocation7 + $0xc0] ss:$16 sps:$4 sm:$0xff]  }
  0x65   :  { %544 = vmatpush1.bf16.msra.mxu1 %v2952_v40  ;;  %v2989_v21 = vld [vmem:[#allocation7 + $0x28] ss:$16 sps:$4 sm:$0xff]   ;;  %v3022_v24 = vld [vmem:[#allocation7 + $0xe0] ss:$16 sps:$4 sm:$0xff]  }
  0x66   :  { %545 = vmatprep.subr.bf16.mxu1 %v2953_v41  ;;  %v2995_v25 = vld [vmem:[#allocation7 + $0x48] ss:$16 sps:$4 sm:$0xff]   ;;  %v3028_v28 = vld [vmem:[#allocation7 + $0x100] ss:$16 sps:$4 sm:$0xff]  }
  0x67   :  { %505 = vmatpush1.bf16.msra.mxu0 %v2907_v22  ;;  %v3024_v22 = vld [vmem:[#allocation7 + $0xe4] ss:$16 sps:$4 sm:$0xff]   ;;  %v3001_v29 = vld [vmem:[#allocation7 + $0x68] ss:$16 sps:$4 sm:$0xff]   ;;  %v3034_v32 = vld [vmem:[#allocation7 + $0x120] ss:$16 sps:$4 sm:$0xff]  }
  0x68   :  { %506 = vmatprep.subr.bf16.mxu0 %v2908_v23  ;;  %v2997_v23 = vld [vmem:[#allocation7 + $0x4c] ss:$16 sps:$4 sm:$0xff]   ;;  %v3007_v33 = vld [vmem:[#allocation7 + $0x88] ss:$16 sps:$4 sm:$0xff]   ;;  %v3040_v36 = vld [vmem:[#allocation7 + $0x140] ss:$16 sps:$4 sm:$0xff]  }
  0x69   :  { %546 = vmatpush1.bf16.msra.mxu1 %v2955_v44  ;;  %v3013_v37 = vld [vmem:[#allocation7 + $0xa8] ss:$16 sps:$4 sm:$0xff]   ;;  %v3046_v40 = vld [vmem:[#allocation7 + $0x160] ss:$16 sps:$4 sm:$0xff]  }
  0x6a   :  { %547 = vmatprep.subr.bf16.mxu1 %v2956_v45  ;;  %v3019_v41 = vld [vmem:[#allocation7 + $0xc8] ss:$16 sps:$4 sm:$0xff]   ;;  %v3052_v44 = vld [vmem:[#allocation7 + $0x180] ss:$16 sps:$4 sm:$0xff]  }
  0x6b   :  { %507 = vmatpush1.bf16.msra.mxu0 %v2910_v26  ;;  %v3030_v26 = vld [vmem:[#allocation7 + $0x104] ss:$16 sps:$4 sm:$0xff]   ;;  %v3025_v45 = vld [vmem:[#allocation7 + $0xe8] ss:$16 sps:$4 sm:$0xff]  }
  0x6c   :  { %508 = vmatprep.subr.bf16.mxu0 %v2911_v27  ;;  %v3003_v27 = vld [vmem:[#allocation7 + $0x6c] ss:$16 sps:$4 sm:$0xff]   ;;  %v3049_v55 = vld [vmem:[#allocation7 + $0x168] ss:$16 sps:$4 sm:$0xff]  }
  0x6d   :  { %548 = vmatpush1.bf16.msra.mxu1 %v2958_v48  ;;  %v3058_v48 = vld [vmem:[#allocation7 + $0x1a0] ss:$16 sps:$4 sm:$0xff]  }
  0x6e   :  { %549 = vmatprep.subr.bf16.mxu1 %v2959_v49  ;;  %v3031_v49 = vld [vmem:[#allocation7 + $0x108] ss:$16 sps:$4 sm:$0xff]  }
  0x6f   :  { %509 = vmatpush1.bf16.msra.mxu0 %v2913_v30  ;;  %v3036_v30 = vld [vmem:[#allocation7 + $0x124] ss:$16 sps:$4 sm:$0xff]  }
  0x70   :  { %510 = vmatprep.subr.bf16.mxu0 %v2914_v31  ;;  %v3009_v31 = vld [vmem:[#allocation7 + $0x8c] ss:$16 sps:$4 sm:$0xff]  }
  0x71   :  { %550 = vmatpush1.bf16.msra.mxu1 %v2961_v52  ;;  %v3045_v52 = vld [vmem:[#allocation7 + $0x14c] ss:$16 sps:$4 sm:$0xff]  }
  0x72   :  { %551 = vmatprep.subr.bf16.mxu1 %v2962_v53  ;;  %v3043_v53 = vld [vmem:[#allocation7 + $0x148] ss:$16 sps:$4 sm:$0xff]  }
  0x73   :  { %511 = vmatpush1.bf16.msra.mxu0 %v2916_v34  ;;  %v3042_v34 = vld [vmem:[#allocation7 + $0x144] ss:$16 sps:$4 sm:$0xff]  }
  0x74   :  { %512 = vmatprep.subr.bf16.mxu0 %v2917_v35  ;;  %v3015_v35 = vld [vmem:[#allocation7 + $0xac] ss:$16 sps:$4 sm:$0xff]  }
  0x75   :  { %552 = vmatpush1.bf16.msra.mxu1 %v2964_v56  ;;  %v3057_v56 = vld [vmem:[#allocation7 + $0x18c] ss:$16 sps:$4 sm:$0xff]  }
  0x76   :  { %553 = vmatprep.subr.bf16.mxu1 %v2965_v58  ;;  %v3063_v58 = vld [vmem:[#allocation7 + $0x1ac] ss:$16 sps:$4 sm:$0xff]  }
  0x77   :  { %513 = vmatpush1.bf16.msra.mxu0 %v2919_v38  ;;  %v3048_v38 = vld [vmem:[#allocation7 + $0x164] ss:$16 sps:$4 sm:$0xff]  }
  0x78   :  { %514 = vmatprep.subr.bf16.mxu0 %v2920_v39  ;;  %v3021_v39 = vld [vmem:[#allocation7 + $0xcc] ss:$16 sps:$4 sm:$0xff]  }
  0x79   :  { %554 = vmatpush1.bf16.msra.mxu1 %v2967_v61  ;;  %v3069_v61 = vld [vmem:[#allocation7 + $0x1cc] ss:$16 sps:$4 sm:$0xff]  }
  0x7a   :  { %555 = vmatprep.subr.bf16.mxu1 %v2968_v63  ;;  %v3067_v63 = vld [vmem:[#allocation7 + $0x1c8] ss:$16 sps:$4 sm:$0xff]  }
  0x7b   :  { %515 = vmatpush1.bf16.msra.mxu0 %v2922_v42  ;;  %v3054_v42 = vld [vmem:[#allocation7 + $0x184] ss:$16 sps:$4 sm:$0xff]  }
  0x7c   :  { %516 = vmatprep.subr.bf16.mxu0 %v2923_v43  ;;  %v3027_v43 = vld [vmem:[#allocation7 + $0xec] ss:$16 sps:$4 sm:$0xff]  }
  0x7d   :  { %556 = vmatpush1.bf16.msra.mxu1 %v2970_v1  ;;  %v3075_v1 = vld [vmem:[#allocation7 + $0x1ec] ss:$16 sps:$4 sm:$0xff]  }
  0x7e   :  { %557 = vmatprep.subr.bf16.mxu1 %v2971_v3  ;;  %v3073_v3 = vld [vmem:[#allocation7 + $0x1e8] ss:$16 sps:$4 sm:$0xff]  }
  0x7f   :  { %517 = vmatpush1.bf16.msra.mxu0 %v2925_v46  ;;  %v3060_v46 = vld [vmem:[#allocation7 + $0x1a4] ss:$16 sps:$4 sm:$0xff]  }
  0x80   :  { %518 = vmatprep.subr.bf16.mxu0 %v2926_v47  ;;  %v3033_v47 = vld [vmem:[#allocation7 + $0x10c] ss:$16 sps:$4 sm:$0xff]  }
  0x81   :  { %558 = vmatpush1.bf16.msra.mxu1 %v2973_v5  ;;  %v3081_v5 = vld [vmem:[#allocation7 + $0x20c] ss:$16 sps:$4 sm:$0xff]  }
  0x82   :  { %559 = vmatprep.subr.bf16.mxu1 %v2974_v7 }
  0x83   :  { %519 = vmatpush1.bf16.msra.mxu0 %v2928_v50  ;;  %v3039_v50 = vld [vmem:[#allocation7 + $0x12c] ss:$16 sps:$4 sm:$0xff]  }
  0x84   :  { %520 = vmatprep.subr.bf16.mxu0 %v2929_v51  ;;  %v3037_v51 = vld [vmem:[#allocation7 + $0x128] ss:$16 sps:$4 sm:$0xff]  }
  0x85   :  { %560 = vmatpush1.bf16.msra.mxu1 %v2976_v9  ;;  %v3594_v9 = vld [vmem:[%s3653_s2] sm:$0xf] }
  0x86   :  { %561 = vmatprep.subr.bf16.mxu1 %v2977_v11 }
  0x87   :  { %521 = vmatpush1.bf16.msra.mxu0 %v2933_v54  ;;  %v3051_v54 = vld [vmem:[#allocation7 + $0x16c] ss:$16 sps:$4 sm:$0xff]  }
  0x88   :  { %1378 = vmatprep.subr.bf16.mxu0 %v2982_v57  ;;  %v3055_v57 = vld [vmem:[#allocation7 + $0x188] ss:$16 sps:$4 sm:$0xff]  }
  0x89   :  { %562 = vmatpush1.bf16.msra.mxu1 %v2979_v13 }
  0x8a   :  { %523 = vmatmul.mubr.bf16.vlgmr.msra.gmra.mrb[0].mxu0 %v82_v59  ;;  %1460 = vmatprep.subr.bf16.mxu1 %v2985_v14 }
  0x8b   :  { %1379 = vmatpush1.bf16.msra.mxu0 %v2980_v60  ;;  %v3066_v60 = vld [vmem:[#allocation7 + $0x1c4] ss:$16 sps:$4 sm:$0xff]  }
  0x8c   :  { %1380 = vmatprep.subr.bf16.mxu0 %v2988_v62  ;;  %564 = vmatmul.mubr.bf16.vlgmr.msra.gmra.mrb[0].mxu1 %v82_v59  ;;  %v3061_v59 = vld [vmem:[#allocation7 + $0x1a8] ss:$16 sps:$4 sm:$0xff]   ;;  %v3064_v62 = vld [vmem:[#allocation7 + $0x1c0] ss:$16 sps:$4 sm:$0xff]  }
  0x8d   :  { %1461 = vmatpush1.bf16.msra.mxu1 %v2983_v17 }
  0x8e   :  { %1462 = vmatprep.subr.bf16.mxu1 %v2991_v19 }
  0x8f   :  { %1381 = vmatpush1.bf16.msra.mxu0 %v2986_v0  ;;  %v3072_v0 = vld [vmem:[#allocation7 + $0x1e4] ss:$16 sps:$4 sm:$0xff]  }
  0x90   :  { %1382 = vmatprep.subr.bf16.mxu0 %v2994_v2  ;;  %v3070_v2 = vld [vmem:[#allocation7 + $0x1e0] ss:$16 sps:$4 sm:$0xff]  }
  0x91   :  { %1463 = vmatpush1.bf16.msra.mxu1 %v2989_v21 }
  0x92   :  { %1464 = vmatprep.subr.bf16.mxu1 %v2997_v23 }
  0x93   :  { %1383 = vmatpush1.bf16.msra.mxu0 %v2992_v4  ;;  %v3078_v4 = vld [vmem:[#allocation7 + $0x204] ss:$16 sps:$4 sm:$0xff]  }
  0x94   :  { %1384 = vmatprep.subr.bf16.mxu0 %v3000_v6  ;;  %v150_v6 = vlaneseq }
  0x95   :  { %1465 = vmatpush1.bf16.msra.mxu1 %v2995_v25  ;;  %v3079_v25 = vld [vmem:[#allocation7 + $0x208] ss:$16 sps:$4 sm:$0xff]  }
  0x96   :  { %1466 = vmatprep.subr.bf16.mxu1 %v3003_v27  ;;  %v3586_v7 = vshrl.u32 %v150_v6, 7  ;;  %v3084_v27 = vld [vmem:[#allocation7 + $0x224] ss:$16 sps:$4 sm:$0xff]   ;;  %v3135_v6 = vld [vmem:[#allocation7 + $0x32c] ss:$16 sps:$4 sm:$0xff]  }
  0x97   :  { %1385 = vmatpush1.bf16.msra.mxu0 %v2998_v8 }
  0x98   :  { %1386 = vmatprep.subr.bf16.mxu0 %v3006_v10  ;;  %v3589_v8 = vsub.s32 0, %v3586_v7  ;;  %v3597_v10 = vsub.s32 1, %v3586_v7 }
  0x99   :  { %1467 = vmatpush1.bf16.msra.mxu1 %v3001_v29  ;;  %v3082_v29 = vld [vmem:[#allocation7 + $0x220] ss:$16 sps:$4 sm:$0xff]  }
  0x9a   :  { %1468 = vmatprep.subr.bf16.mxu1 %v3009_v31  ;;  %v153_v11 = vrot.slane %v3594_v9, %v3589_v8  ;;  %v3090_v31 = vld [vmem:[#allocation7 + $0x244] ss:$16 sps:$4 sm:$0xff]  }
  0x9b   :  { %1387 = vmatpush1.bf16.msra.mxu0 %v3004_v12  ;;  %v157_v12 = vrot.slane %v3594_v9, %v3597_v10 }
  0x9c   :  { %1388 = vmatprep.subr.bf16.mxu0 %v3012_v15 }
  0x9d   :  { %1469 = vmatpush1.bf16.msra.mxu1 %v3007_v33  ;;  %v3088_v33 = vld [vmem:[#allocation7 + $0x240] ss:$16 sps:$4 sm:$0xff]  }
  0x9e   :  { %1470 = vmatprep.subr.bf16.mxu1 %v3015_v35  ;;  %v3604_v35 = vsub.s32 3, %v3586_v7 }
  0x9f   :  { %1389 = vmatpush1.bf16.msra.mxu0 %v3010_v16 }
  0xa0   :  { %1390 = vmatprep.subr.bf16.mxu0 %v3018_v18 }
  0xa1   :  { %1471 = vmatpush1.bf16.msra.mxu1 %v3013_v37  ;;  %v3099_v37 = vld [vmem:[#allocation7 + $0x26c] ss:$16 sps:$4 sm:$0xff]  }
  0xa2   :  { %1472 = vmatprep.subr.bf16.mxu1 %v3021_v39  ;;  %v3097_v39 = vld [vmem:[#allocation7 + $0x268] ss:$16 sps:$4 sm:$0xff]  }
  0xa3   :  { %1391 = vmatpush1.bf16.msra.mxu0 %v3016_v20 }
  0xa4   :  { %1392 = vmatprep.subr.bf16.mxu0 %v3024_v22 }
  0xa5   :  { %1473 = vmatpush1.bf16.msra.mxu1 %v3019_v41  ;;  %v3102_v41 = vld [vmem:[#allocation7 + $0x284] ss:$16 sps:$4 sm:$0xff]  }
  0xa6   :  { %1474 = vmatprep.subr.bf16.mxu1 %v3027_v43 }
  0xa7   :  { %1393 = vmatpush1.bf16.msra.mxu0 %v3022_v24  ;;  %v3076_v24 = vld [vmem:[#allocation7 + $0x200] ss:$16 sps:$4 sm:$0xff]  }
  0xa8   :  { %1394 = vmatprep.subr.bf16.mxu0 %v3030_v26 }
  0xa9   :  { %1475 = vmatpush1.bf16.msra.mxu1 %v3025_v45  ;;  %v3100_v45 = vld [vmem:[#allocation7 + $0x280] ss:$16 sps:$4 sm:$0xff]  }
  0xaa   :  { %1476 = vmatprep.subr.bf16.mxu1 %v3033_v47 }
  0xab   :  { %1395 = vmatpush1.bf16.msra.mxu0 %v3028_v28  ;;  %v3087_v28 = vld [vmem:[#allocation7 + $0x22c] ss:$16 sps:$4 sm:$0xff]  }
  0xac   :  { %1396 = vmatprep.subr.bf16.mxu0 %v3036_v30  ;;  %v3085_v30 = vld [vmem:[#allocation7 + $0x228] ss:$16 sps:$4 sm:$0xff]  }
  0xad   :  { %1477 = vmatpush1.bf16.msra.mxu1 %v3031_v49  ;;  %v3108_v49 = vld [vmem:[#allocation7 + $0x2a4] ss:$16 sps:$4 sm:$0xff]  }
  0xae   :  { %1478 = vmatprep.subr.bf16.mxu1 %v3039_v50  ;;  %v3111_v50 = vld [vmem:[#allocation7 + $0x2ac] ss:$16 sps:$4 sm:$0xff]  }
  0xaf   :  { %1397 = vmatpush1.bf16.msra.mxu0 %v3034_v32  ;;  %v3093_v32 = vld [vmem:[#allocation7 + $0x24c] ss:$16 sps:$4 sm:$0xff]  }
  0xb0   :  { %1398 = vmatprep.subr.bf16.mxu0 %v3042_v34  ;;  %v3091_v34 = vld [vmem:[#allocation7 + $0x248] ss:$16 sps:$4 sm:$0xff]  }
  0xb1   :  { %1479 = vmatpush1.bf16.msra.mxu1 %v3037_v51 }
  0xb2   :  { %1480 = vmatprep.subr.bf16.mxu1 %v3045_v52 }
  0xb3   :  { %1399 = vmatpush1.bf16.msra.mxu0 %v3040_v36  ;;  %v3096_v36 = vld [vmem:[#allocation7 + $0x264] ss:$16 sps:$4 sm:$0xff]  }
  0xb4   :  { %1400 = vmatprep.subr.bf16.mxu0 %v3048_v38  ;;  %v3094_v38 = vld [vmem:[#allocation7 + $0x260] ss:$16 sps:$4 sm:$0xff]  }
  0xb5   :  { %1481 = vmatpush1.bf16.msra.mxu1 %v3043_v53  ;;  %v3106_v53 = vld [vmem:[#allocation7 + $0x2a0] ss:$16 sps:$4 sm:$0xff]  }
  0xb6   :  { %1482 = vmatprep.subr.bf16.mxu1 %v3051_v54  ;;  %v3109_v54 = vld [vmem:[#allocation7 + $0x2a8] ss:$16 sps:$4 sm:$0xff]  }
  0xb7   :  { %1401 = vmatpush1.bf16.msra.mxu0 %v3046_v40  ;;  %v165_v40 = vrot.slane %v3594_v9, %v3604_v35 }
  0xb8   :  { %1402 = vmatprep.subr.bf16.mxu0 %v3054_v42  ;;  %v3105_v42 = vld [vmem:[#allocation7 + $0x28c] ss:$16 sps:$4 sm:$0xff]  }
  0xb9   :  { %1483 = vmatpush1.bf16.msra.mxu1 %v3049_v55 }
  0xba   :  { %1484 = vmatprep.subr.bf16.mxu1 %v3057_v56  ;;  %v3114_v56 = vld [vmem:[#allocation7 + $0x2c4] ss:$16 sps:$4 sm:$0xff]  }
  0xbb   :  { %1403 = vmatpush1.bf16.msra.mxu0 %v3052_v44 }
  0xbc   :  { %1404 = vmatprep.subr.bf16.mxu0 %v3060_v46  ;;  %v3103_v46 = vld [vmem:[#allocation7 + $0x288] ss:$16 sps:$4 sm:$0xff]  }
  0xbd   :  { %1485 = vmatpush1.bf16.msra.mxu1 %v3055_v57  ;;  %v3117_v57 = vld [vmem:[#allocation7 + $0x2cc] ss:$16 sps:$4 sm:$0xff]  }
  0xbe   :  { %1486 = vmatprep.subr.bf16.mxu1 %v3063_v58 }
  0xbf   :  { %1405 = vmatpush1.bf16.msra.mxu0 %v3058_v48 }
  0xc0   :  { %1406 = vmatprep.subr.bf16.mxu0 %v3066_v60  ;;  %v3115_v60 = vld [vmem:[#allocation7 + $0x2c8] ss:$16 sps:$4 sm:$0xff]  }
  0xc1   :  { %1487 = vmatpush1.bf16.msra.mxu1 %v3061_v59  ;;  %v3112_v59 = vld [vmem:[#allocation7 + $0x2c0] ss:$16 sps:$4 sm:$0xff]  }
  0xc2   :  { %1488 = vmatprep.subr.bf16.mxu1 %v3069_v61  ;;  %v3120_v61 = vld [vmem:[#allocation7 + $0x2e4] ss:$16 sps:$4 sm:$0xff]  }
  0xc3   :  { %1407 = vmatpush1.bf16.msra.mxu0 %v3064_v62  ;;  %v3123_v62 = vld [vmem:[#allocation7 + $0x2ec] ss:$16 sps:$4 sm:$0xff]  }
  0xc4   :  { %1408 = vmatprep.subr.bf16.mxu0 %v3072_v0  ;;  %v3121_v0 = vld [vmem:[#allocation7 + $0x2e8] ss:$16 sps:$4 sm:$0xff]  }
  0xc5   :  { %1489 = vmatpush1.bf16.msra.mxu1 %v3067_v63  ;;  %v3118_v63 = vld [vmem:[#allocation7 + $0x2e0] ss:$16 sps:$4 sm:$0xff]  }
  0xc6   :  { %1490 = vmatprep.subr.bf16.mxu1 %v3075_v1  ;;  %v3126_v1 = vld [vmem:[#allocation7 + $0x304] ss:$16 sps:$4 sm:$0xff]  }
  0xc7   :  { %1409 = vmatpush1.bf16.msra.mxu0 %v3070_v2  ;;  %v3129_v2 = vld [vmem:[#allocation7 + $0x30c] ss:$16 sps:$4 sm:$0xff]  }
  0xc8   :  { %1419 = vmatprep.subr.bf16.mxu0 %v3078_v4  ;;  %v3127_v4 = vld [vmem:[#allocation7 + $0x308] ss:$16 sps:$4 sm:$0xff]  }
  0xc9   :  { %1491 = vmatpush1.bf16.msra.mxu1 %v3073_v3  ;;  %v3124_v3 = vld [vmem:[#allocation7 + $0x300] ss:$16 sps:$4 sm:$0xff]  }
  0xca   :  { %1501 = vmatprep.subr.bf16.mxu1 %v3081_v5  ;;  %v3132_v5 = vld [vmem:[#allocation7 + $0x324] ss:$16 sps:$4 sm:$0xff]  }
 0x15d   :  { %v524_v13 = vpop.f32.mrb[0].mxu0 }
 0x15e   :  { %v525_v14 = vadd.f32 %v524_v13, %v153_v11  ;;  %v526_v15 = vpop.f32.mrb[1].mxu0  ;;  %v3130_v11 = vld [vmem:[#allocation7 + $0x320] ss:$16 sps:$4 sm:$0xff]   ;;  %v3138_v13 = vld [vmem:[#allocation7 + $0x344] ss:$16 sps:$4 sm:$0xff]  }
 0x15f   :  { %v527_v16 = vadd.f32 %v526_v15, %v157_v12  ;;  %v528_v17 = vpop.f32.mrb[2].mxu0  ;;  %v3608_v43 = vpop.f32.mrb[0].mxu1  ;;  %v3133_v12 = vld [vmem:[#allocation7 + $0x328] ss:$16 sps:$4 sm:$0xff]   ;;  %v3136_v15 = vld [vmem:[#allocation7 + $0x340] ss:$16 sps:$4 sm:$0xff]  }
 0x160   :  { %vm572_vm0 = vcmp.gt.f32.partialorder %v525_v14, 0.0  ;;  %v576_v18 = vmul.f32 0.2, %v525_v14  ;;  %v529_v19 = vpop.f32.mrb[3].mxu0  ;;  %v567_v44 = vpop.f32.mrb[1].mxu1 }
 0x161   :  { %vm573_vm1 = vcmp.gt.f32.partialorder %v527_v16, 0.0  ;;  %v577_v20 = vmul.f32 0.2, %v527_v16  ;;  %v568_v47 = vadd.f32 %v567_v44, %v165_v40  ;;  %v569_v48 = vpop.f32.mrb[2].mxu1  ;;  %v3144_v17 = vld [vmem:[#allocation7 + $0x364] ss:$16 sps:$4 sm:$0xff]  }
 0x162   :  { %v580_v21 = vsel %vm572_vm0, %v525_v14, %v576_v18  ;;  %v570_v51 = vpop.f32.mrb[3].mxu1  ;;  %v3141_v14 = vld [vmem:[#allocation7 + $0x34c] ss:$16 sps:$4 sm:$0xff]   ;;  %v3142_v19 = vld [vmem:[#allocation7 + $0x360] ss:$16 sps:$4 sm:$0xff]  }
 0x163   :  { %v581_v22 = vsel %vm573_vm1, %v527_v16, %v577_v20  ;;  %v584_v26 = vpack.c.bf16 %v580_v21, %v580_v21  ;;  %vm575_vm2 = vcmp.gt.f32.partialorder %v568_v47, 0.0  ;;  %v579_v52 = vmul.f32 0.2, %v568_v47  ;;  %v3139_v16 = vld [vmem:[#allocation7 + $0x348] ss:$16 sps:$4 sm:$0xff]  }
 0x164   :  { %v585_v23 = vpack.c.bf16 %v581_v22, %v581_v22  ;;  %v3147_v18 = vld [vmem:[#allocation7 + $0x36c] ss:$16 sps:$4 sm:$0xff]   ;;  %v3145_v20 = vld [vmem:[#allocation7 + $0x368] ss:$16 sps:$4 sm:$0xff]   ;;  %v3150_v21 = vld [vmem:[#allocation7 + $0x384] ss:$16 sps:$4 sm:$0xff]  }
 0x165   :  { %v583_v55 = vsel %vm575_vm2, %v568_v47, %v579_v52  ;;  %v3153_v22 = vld [vmem:[#allocation7 + $0x38c] ss:$16 sps:$4 sm:$0xff]   ;;  %v3174_v40 = vld [vmem:[#allocation8 + $0x4] ss:$16 sps:$4 sm:$0xff]   ;;  %v3175_v44 = vld [vmem:[#allocation8 + $0x8] ss:$16 sps:$4 sm:$0xff]  }
 0x166   :  { %1410 = vmatprep.mubr.bf16.mxu0 %v585_v23  ;;  %1492 = vmatprep.mubr.bf16.mxu1 %v585_v23  ;;  %v587_v58 = vpack.c.bf16 %v583_v55, %v583_v55  ;;  %v3611_v23 = vsub.s32 2, %v3586_v7  ;;  %v3165_v7 = vld [vmem:[#allocation7 + $0x3cc] ss:$16 sps:$4 sm:$0xff]   ;;  %v3178_v48 = vld [vmem:[#allocation8 + $0x20] ss:$16 sps:$4 sm:$0xff]  }
 0x167   :  { %1411 = vmatmul.mubr.bf16.vlgmr.msra.gmra.mrb[4].mxu0 %v584_v26  ;;  %1493 = vmatmul.mubr.bf16.vlgmr.msra.gmra.mrb[4].mxu1 %v584_v26  ;;  %v3156_v26 = vld [vmem:[#allocation7 + $0x3a4] ss:$16 sps:$4 sm:$0xff]   ;;  %v3183_v47 = vld [vmem:[#allocation8 + $0x2c] ss:$16 sps:$4 sm:$0xff]   ;;  %v3184_v52 = vld [vmem:[#allocation8 + $0x40] ss:$16 sps:$4 sm:$0xff]  }
 0x168   :  { %1420 = vmatpush1.bf16.msra.mxu0 %v3076_v24  ;;  %1502 = vmatpush1.bf16.msra.mxu1 %v3079_v25  ;;  %v3148_v24 = vld [vmem:[#allocation7 + $0x380] ss:$16 sps:$4 sm:$0xff]   ;;  %v3151_v25 = vld [vmem:[#allocation7 + $0x388] ss:$16 sps:$4 sm:$0xff]   ;;  %v3189_v51 = vld [vmem:[#allocation8 + $0x4c] ss:$16 sps:$4 sm:$0xff]  }
 0x169   :  { %1421 = vmatprep.subr.bf16.mxu0 %v3084_v27  ;;  %1503 = vmatprep.subr.bf16.mxu1 %v3087_v28  ;;  %v3159_v27 = vld [vmem:[#allocation7 + $0x3ac] ss:$16 sps:$4 sm:$0xff]   ;;  %v161_v28 = vrot.slane %v3594_v9, %v3611_v23  ;;  %v3166_v9 = vld [vmem:[#allocation7 + $0x3e0] ss:$16 sps:$4 sm:$0xff]  }
 0x16a   :  { %1451 = vmatprep.mubr.bf16.mxu0 %v587_v58  ;;  %1533 = vmatprep.mubr.bf16.mxu1 %v587_v58  ;;  %v3195_v55 = vld [vmem:[#allocation8 + $0x6c] ss:$16 sps:$4 sm:$0xff]   ;;  %v3198_v58 = vld [vmem:[#allocation8 + $0x84] ss:$16 sps:$4 sm:$0xff]  }
 0x16c   :  { %1422 = vmatpush1.bf16.msra.mxu0 %v3082_v29  ;;  %1504 = vmatpush1.bf16.msra.mxu1 %v3085_v30  ;;  %v3154_v29 = vld [vmem:[#allocation7 + $0x3a0] ss:$16 sps:$4 sm:$0xff]   ;;  %v3157_v30 = vld [vmem:[#allocation7 + $0x3a8] ss:$16 sps:$4 sm:$0xff]  }
 0x16d   :  { %1423 = vmatprep.subr.bf16.mxu0 %v3090_v31  ;;  %1505 = vmatprep.subr.bf16.mxu1 %v3093_v32  ;;  %v3162_v31 = vld [vmem:[#allocation7 + $0x3c4] ss:$16 sps:$4 sm:$0xff]   ;;  %v566_v32 = vadd.f32 %v3608_v43, %v161_v28  ;;  %v3172_v43 = vld [vmem:[#allocation8] ss:$16 sps:$4 sm:$0xff]   ;;  %v3243_v28 = vld [vmem:[#allocation8 + $0x16c] ss:$16 sps:$4 sm:$0xff]  }
 0x16f   :  { %vm574_vm3 = vcmp.gt.f32.partialorder %v566_v32, 0.0 }
 0x170   :  { %1424 = vmatpush1.bf16.msra.mxu0 %v3088_v33  ;;  %1506 = vmatpush1.bf16.msra.mxu1 %v3091_v34  ;;  %v3160_v33 = vld [vmem:[#allocation7 + $0x3c0] ss:$16 sps:$4 sm:$0xff]   ;;  %v3163_v34 = vld [vmem:[#allocation7 + $0x3c8] ss:$16 sps:$4 sm:$0xff]  }
 0x171   :  { %1425 = vmatprep.subr.bf16.mxu0 %v3096_v36  ;;  %1507 = vmatprep.subr.bf16.mxu1 %v3099_v37  ;;  %v3168_v36 = vld [vmem:[#allocation7 + $0x3e4] ss:$16 sps:$4 sm:$0xff]   ;;  %v3171_v37 = vld [vmem:[#allocation7 + $0x3ec] ss:$16 sps:$4 sm:$0xff]  }
 0x174   :  { %1426 = vmatpush1.bf16.msra.mxu0 %v3094_v38  ;;  %1508 = vmatpush1.bf16.msra.mxu1 %v3097_v39  ;;  %v578_v38 = vmul.f32 0.2, %v566_v32  ;;  %v3169_v39 = vld [vmem:[#allocation7 + $0x3e8] ss:$16 sps:$4 sm:$0xff]  }
 0x175   :  { %1427 = vmatprep.subr.bf16.mxu0 %v3102_v41  ;;  %1509 = vmatprep.subr.bf16.mxu1 %v3105_v42  ;;  %v3177_v41 = vld [vmem:[#allocation8 + $0xc] ss:$16 sps:$4 sm:$0xff]  }
 0x176   :  { %v582_v42 = vsel %vm574_vm3, %v566_v32, %v578_v38  ;;  %v3244_v32 = vld [vmem:[#allocation8 + $0x180] ss:$16 sps:$4 sm:$0xff]   ;;  %v3253_v38 = vld [vmem:[#allocation8 + $0x1a8] ss:$16 sps:$4 sm:$0xff]  }
 0x178   :  { %1428 = vmatpush1.bf16.msra.mxu0 %v3100_v45  ;;  %1510 = vmatpush1.bf16.msra.mxu1 %v3103_v46  ;;  %v586_v45 = vpack.c.bf16 %v582_v42, %v582_v42  ;;  %v3180_v46 = vld [vmem:[#allocation8 + $0x24] ss:$16 sps:$4 sm:$0xff]  }
 0x179   :  { %1429 = vmatprep.subr.bf16.mxu0 %v3108_v49  ;;  %1511 = vmatprep.subr.bf16.mxu1 %v3111_v50  ;;  %v3181_v49 = vld [vmem:[#allocation8 + $0x28] ss:$16 sps:$4 sm:$0xff]   ;;  %v3186_v50 = vld [vmem:[#allocation8 + $0x44] ss:$16 sps:$4 sm:$0xff]  }
 0x17a   :  { %v3264_v42 = vld [vmem:[#allocation8 + $0x1e4] ss:$16 sps:$4 sm:$0xff]  }
 0x17c   :  { %1430 = vmatpush1.bf16.msra.mxu0 %v3106_v53  ;;  %1512 = vmatpush1.bf16.msra.mxu1 %v3109_v54  ;;  %v3187_v53 = vld [vmem:[#allocation8 + $0x48] ss:$16 sps:$4 sm:$0xff]   ;;  %v3192_v54 = vld [vmem:[#allocation8 + $0x64] ss:$16 sps:$4 sm:$0xff]  }
 0x17d   :  { %1431 = vmatprep.subr.bf16.mxu0 %v3114_v56  ;;  %1513 = vmatprep.subr.bf16.mxu1 %v3117_v57  ;;  %v3190_v56 = vld [vmem:[#allocation8 + $0x60] ss:$16 sps:$4 sm:$0xff]   ;;  %v3193_v57 = vld [vmem:[#allocation8 + $0x68] ss:$16 sps:$4 sm:$0xff]  }
 0x180   :  { %1432 = vmatpush1.bf16.msra.mxu0 %v3112_v59  ;;  %1514 = vmatpush1.bf16.msra.mxu1 %v3115_v60  ;;  %v3201_v59 = vld [vmem:[#allocation8 + $0x8c] ss:$16 sps:$4 sm:$0xff]   ;;  %v3196_v60 = vld [vmem:[#allocation8 + $0x80] ss:$16 sps:$4 sm:$0xff]  }
 0x181   :  { %1433 = vmatprep.subr.bf16.mxu0 %v3120_v61  ;;  %1515 = vmatprep.subr.bf16.mxu1 %v3123_v62  ;;  %v3199_v61 = vld [vmem:[#allocation8 + $0x88] ss:$16 sps:$4 sm:$0xff]   ;;  %v3204_v62 = vld [vmem:[#allocation8 + $0xa4] ss:$16 sps:$4 sm:$0xff]  }
 0x184   :  { %1434 = vmatpush1.bf16.msra.mxu0 %v3118_v63  ;;  %1516 = vmatpush1.bf16.msra.mxu1 %v3121_v0  ;;  %v3207_v63 = vld [vmem:[#allocation8 + $0xac] ss:$16 sps:$4 sm:$0xff]   ;;  %v3202_v0 = vld [vmem:[#allocation8 + $0xa0] ss:$16 sps:$4 sm:$0xff]  }
 0x185   :  { %1435 = vmatprep.subr.bf16.mxu0 %v3126_v1  ;;  %1517 = vmatprep.subr.bf16.mxu1 %v3129_v2  ;;  %v3205_v1 = vld [vmem:[#allocation8 + $0xa8] ss:$16 sps:$4 sm:$0xff]   ;;  %v3210_v2 = vld [vmem:[#allocation8 + $0xc4] ss:$16 sps:$4 sm:$0xff]  }
 0x188   :  { %1436 = vmatpush1.bf16.msra.mxu0 %v3124_v3  ;;  %1518 = vmatpush1.bf16.msra.mxu1 %v3127_v4  ;;  %v3213_v3 = vld [vmem:[#allocation8 + $0xcc] ss:$16 sps:$4 sm:$0xff]   ;;  %v3208_v4 = vld [vmem:[#allocation8 + $0xc0] ss:$16 sps:$4 sm:$0xff]  }
 0x189   :  { %1437 = vmatprep.subr.bf16.mxu0 %v3132_v5  ;;  %1519 = vmatprep.subr.bf16.mxu1 %v3135_v6  ;;  %v3211_v5 = vld [vmem:[#allocation8 + $0xc8] ss:$16 sps:$4 sm:$0xff]   ;;  %v3216_v6 = vld [vmem:[#allocation8 + $0xe4] ss:$16 sps:$4 sm:$0xff]  }
 0x18c   :  { %1438 = vmatpush1.bf16.msra.mxu0 %v3130_v11  ;;  %1520 = vmatpush1.bf16.msra.mxu1 %v3133_v12  ;;  %v3219_v11 = vld [vmem:[#allocation8 + $0xec] ss:$16 sps:$4 sm:$0xff]   ;;  %v3214_v12 = vld [vmem:[#allocation8 + $0xe0] ss:$16 sps:$4 sm:$0xff]  }
 0x18d   :  { %1439 = vmatprep.subr.bf16.mxu0 %v3138_v13  ;;  %1521 = vmatprep.subr.bf16.mxu1 %v3141_v14  ;;  %v3217_v13 = vld [vmem:[#allocation8 + $0xe8] ss:$16 sps:$4 sm:$0xff]   ;;  %v3222_v14 = vld [vmem:[#allocation8 + $0x104] ss:$16 sps:$4 sm:$0xff]  }
 0x190   :  { %1440 = vmatpush1.bf16.msra.mxu0 %v3136_v15  ;;  %1522 = vmatpush1.bf16.msra.mxu1 %v3139_v16  ;;  %v3225_v15 = vld [vmem:[#allocation8 + $0x10c] ss:$16 sps:$4 sm:$0xff]   ;;  %v3220_v16 = vld [vmem:[#allocation8 + $0x100] ss:$16 sps:$4 sm:$0xff]  }
 0x191   :  { %1441 = vmatprep.subr.bf16.mxu0 %v3144_v17  ;;  %1523 = vmatprep.subr.bf16.mxu1 %v3147_v18  ;;  %v3223_v17 = vld [vmem:[#allocation8 + $0x108] ss:$16 sps:$4 sm:$0xff]   ;;  %v3228_v18 = vld [vmem:[#allocation8 + $0x124] ss:$16 sps:$4 sm:$0xff]  }
 0x194   :  { %1442 = vmatpush1.bf16.msra.mxu0 %v3142_v19  ;;  %1524 = vmatpush1.bf16.msra.mxu1 %v3145_v20  ;;  %v3231_v19 = vld [vmem:[#allocation8 + $0x12c] ss:$16 sps:$4 sm:$0xff]   ;;  %v3226_v20 = vld [vmem:[#allocation8 + $0x120] ss:$16 sps:$4 sm:$0xff]  }
 0x195   :  { %1443 = vmatprep.subr.bf16.mxu0 %v3150_v21  ;;  %1525 = vmatprep.subr.bf16.mxu1 %v3153_v22  ;;  %v3229_v21 = vld [vmem:[#allocation8 + $0x128] ss:$16 sps:$4 sm:$0xff]   ;;  %v3234_v22 = vld [vmem:[#allocation8 + $0x144] ss:$16 sps:$4 sm:$0xff]  }
 0x198   :  { %1444 = vmatpush1.bf16.msra.mxu0 %v3148_v24  ;;  %1526 = vmatpush1.bf16.msra.mxu1 %v3151_v25  ;;  %v3237_v24 = vld [vmem:[#allocation8 + $0x14c] ss:$16 sps:$4 sm:$0xff]   ;;  %v3232_v25 = vld [vmem:[#allocation8 + $0x140] ss:$16 sps:$4 sm:$0xff]  }
 0x199   :  { %1445 = vmatprep.subr.bf16.mxu0 %v3156_v26  ;;  %1527 = vmatprep.subr.bf16.mxu1 %v3159_v27  ;;  %v3235_v26 = vld [vmem:[#allocation8 + $0x148] ss:$16 sps:$4 sm:$0xff]   ;;  %v3240_v27 = vld [vmem:[#allocation8 + $0x164] ss:$16 sps:$4 sm:$0xff]  }
 0x19c   :  { %1446 = vmatpush1.bf16.msra.mxu0 %v3154_v29  ;;  %1528 = vmatpush1.bf16.msra.mxu1 %v3157_v30  ;;  %v3238_v29 = vld [vmem:[#allocation8 + $0x160] ss:$16 sps:$4 sm:$0xff]   ;;  %v3241_v30 = vld [vmem:[#allocation8 + $0x168] ss:$16 sps:$4 sm:$0xff]  }
 0x19d   :  { %1447 = vmatprep.subr.bf16.mxu0 %v3162_v31  ;;  %1529 = vmatprep.subr.bf16.mxu1 %v3165_v7  ;;  %v3246_v31 = vld [vmem:[#allocation8 + $0x184] ss:$16 sps:$4 sm:$0xff]   ;;  %v3249_v7 = vld [vmem:[#allocation8 + $0x18c] ss:$16 sps:$4 sm:$0xff]  }
 0x1a0   :  { %1448 = vmatpush1.bf16.msra.mxu0 %v3160_v33  ;;  %1530 = vmatpush1.bf16.msra.mxu1 %v3163_v34  ;;  %v3247_v33 = vld [vmem:[#allocation8 + $0x188] ss:$16 sps:$4 sm:$0xff]   ;;  %v3252_v34 = vld [vmem:[#allocation8 + $0x1a4] ss:$16 sps:$4 sm:$0xff]  }
 0x1a1   :  { %1449 = vmatprep.subr.bf16.mxu0 %v3168_v36  ;;  %1531 = vmatprep.subr.bf16.mxu1 %v3171_v37  ;;  %v3255_v36 = vld [vmem:[#allocation8 + $0x1ac] ss:$16 sps:$4 sm:$0xff]   ;;  %v3250_v37 = vld [vmem:[#allocation8 + $0x1a0] ss:$16 sps:$4 sm:$0xff]  }
 0x1a4   :  { %1450 = vmatpush1.bf16.msra.mxu0 %v3166_v9  ;;  %1532 = vmatpush1.bf16.msra.mxu1 %v3169_v39  ;;  %v3258_v9 = vld [vmem:[#allocation8 + $0x1c4] ss:$16 sps:$4 sm:$0xff]   ;;  %v3261_v39 = vld [vmem:[#allocation8 + $0x1cc] ss:$16 sps:$4 sm:$0xff]  }
 0x1a5   :  { %2348 = vmatprep.subr.bf16.mxu0 %v3174_v40  ;;  %2430 = vmatprep.subr.bf16.mxu1 %v3177_v41  ;;  %v3256_v40 = vld [vmem:[#allocation8 + $0x1c0] ss:$16 sps:$4 sm:$0xff]   ;;  %v3259_v41 = vld [vmem:[#allocation8 + $0x1c8] ss:$16 sps:$4 sm:$0xff]  }
 0x1a7   :  { %1452 = vmatmul.mubr.bf16.vlgmr.msra.gmra.mrb[4].mxu0 %v586_v45  ;;  %1534 = vmatmul.mubr.bf16.vlgmr.msra.gmra.mrb[4].mxu1 %v586_v45  ;;  %v3265_v45 = vld [vmem:[#allocation8 + $0x1e8] ss:$16 sps:$4 sm:$0xff]  }
 0x1a8   :  { %2349 = vmatpush1.bf16.msra.mxu0 %v3172_v43  ;;  %2431 = vmatpush1.bf16.msra.mxu1 %v3175_v44  ;;  %v3267_v43 = vld [vmem:[#allocation8 + $0x1ec] ss:$16 sps:$4 sm:$0xff]   ;;  %v3262_v44 = vld [vmem:[#allocation8 + $0x1e0] ss:$16 sps:$4 sm:$0xff]  }
 0x1a9   :  { %2350 = vmatprep.subr.bf16.mxu0 %v3180_v46  ;;  %2432 = vmatprep.subr.bf16.mxu1 %v3183_v47  ;;  %v3270_v46 = vld [vmem:[#allocation8 + $0x204] ss:$16 sps:$4 sm:$0xff]   ;;  %v3273_v47 = vld [vmem:[#allocation8 + $0x20c] ss:$16 sps:$4 sm:$0xff]  }
 0x1ac   :  { %2351 = vmatpush1.bf16.msra.mxu0 %v3178_v48  ;;  %2433 = vmatpush1.bf16.msra.mxu1 %v3181_v49  ;;  %v3619_v48 = vld [vmem:[%s3655_s4] sm:$0xf] }
 0x1ad   :  { %2352 = vmatprep.subr.bf16.mxu0 %v3186_v50  ;;  %2434 = vmatprep.subr.bf16.mxu1 %v3189_v51  ;;  %v721_v49 = vrot.slane %v3619_v48, %v3589_v8  ;;  %v725_v50 = vrot.slane %v3619_v48, %v3597_v10  ;;  %v733_v51 = vrot.slane %v3619_v48, %v3604_v35 }
 0x1b0   :  { %2353 = vmatpush1.bf16.msra.mxu0 %v3184_v52  ;;  %2435 = vmatpush1.bf16.msra.mxu1 %v3187_v53 }
 0x1b1   :  { %2354 = vmatprep.subr.bf16.mxu0 %v3192_v54  ;;  %2436 = vmatprep.subr.bf16.mxu1 %v3195_v55 }
 0x1b4   :  { %2355 = vmatpush1.bf16.msra.mxu0 %v3190_v56  ;;  %2437 = vmatpush1.bf16.msra.mxu1 %v3193_v57 }
 0x1b5   :  { %2356 = vmatprep.subr.bf16.mxu0 %v3198_v58  ;;  %2438 = vmatprep.subr.bf16.mxu1 %v3201_v59 }
 0x1b8   :  { %2357 = vmatpush1.bf16.msra.mxu0 %v3196_v60  ;;  %2439 = vmatpush1.bf16.msra.mxu1 %v3199_v61 }
 0x1b9   :  { %2358 = vmatprep.subr.bf16.mxu0 %v3204_v62  ;;  %2440 = vmatprep.subr.bf16.mxu1 %v3207_v63 }
 0x1bc   :  { %2359 = vmatpush1.bf16.msra.mxu0 %v3202_v0  ;;  %2441 = vmatpush1.bf16.msra.mxu1 %v3205_v1 }
 0x1bd   :  { %2360 = vmatprep.subr.bf16.mxu0 %v3210_v2  ;;  %2442 = vmatprep.subr.bf16.mxu1 %v3213_v3 }
 0x1c0   :  { %2361 = vmatpush1.bf16.msra.mxu0 %v3208_v4  ;;  %2443 = vmatpush1.bf16.msra.mxu1 %v3211_v5  ;;  %v3268_v5 = vld [vmem:[#allocation8 + $0x200] ss:$16 sps:$4 sm:$0xff]  }
 0x1c1   :  { %2362 = vmatprep.subr.bf16.mxu0 %v3216_v6  ;;  %2444 = vmatprep.subr.bf16.mxu1 %v3219_v11  ;;  %v3271_v6 = vld [vmem:[#allocation8 + $0x208] ss:$16 sps:$4 sm:$0xff]  }
 0x1c4   :  { %2363 = vmatpush1.bf16.msra.mxu0 %v3214_v12  ;;  %2445 = vmatpush1.bf16.msra.mxu1 %v3217_v13  ;;  %v3276_v13 = vld [vmem:[#allocation8 + $0x224] ss:$16 sps:$4 sm:$0xff]  }
 0x1c5   :  { %2364 = vmatprep.subr.bf16.mxu0 %v3222_v14  ;;  %2446 = vmatprep.subr.bf16.mxu1 %v3225_v15  ;;  %v3279_v14 = vld [vmem:[#allocation8 + $0x22c] ss:$16 sps:$4 sm:$0xff]  }
 0x1c8   :  { %2365 = vmatpush1.bf16.msra.mxu0 %v3220_v16  ;;  %2447 = vmatpush1.bf16.msra.mxu1 %v3223_v17  ;;  %v3274_v16 = vld [vmem:[#allocation8 + $0x220] ss:$16 sps:$4 sm:$0xff]   ;;  %v3277_v17 = vld [vmem:[#allocation8 + $0x228] ss:$16 sps:$4 sm:$0xff]  }
 0x1c9   :  { %2366 = vmatprep.subr.bf16.mxu0 %v3228_v18  ;;  %2448 = vmatprep.subr.bf16.mxu1 %v3231_v19  ;;  %v3282_v18 = vld [vmem:[#allocation8 + $0x244] ss:$16 sps:$4 sm:$0xff]   ;;  %v3285_v19 = vld [vmem:[#allocation8 + $0x24c] ss:$16 sps:$4 sm:$0xff]  }
 0x1cc   :  { %2367 = vmatpush1.bf16.msra.mxu0 %v3226_v20  ;;  %2449 = vmatpush1.bf16.msra.mxu1 %v3229_v21  ;;  %v3280_v20 = vld [vmem:[#allocation8 + $0x240] ss:$16 sps:$4 sm:$0xff]   ;;  %v3283_v21 = vld [vmem:[#allocation8 + $0x248] ss:$16 sps:$4 sm:$0xff]  }
 0x1cd   :  { %2368 = vmatprep.subr.bf16.mxu0 %v3234_v22  ;;  %2450 = vmatprep.subr.bf16.mxu1 %v3237_v24  ;;  %v3288_v22 = vld [vmem:[#allocation8 + $0x264] ss:$16 sps:$4 sm:$0xff]   ;;  %v3291_v24 = vld [vmem:[#allocation8 + $0x26c] ss:$16 sps:$4 sm:$0xff]  }
 0x1d0   :  { %2369 = vmatpush1.bf16.msra.mxu0 %v3232_v25  ;;  %2451 = vmatpush1.bf16.msra.mxu1 %v3235_v26  ;;  %v3286_v25 = vld [vmem:[#allocation8 + $0x260] ss:$16 sps:$4 sm:$0xff]   ;;  %v3289_v26 = vld [vmem:[#allocation8 + $0x268] ss:$16 sps:$4 sm:$0xff]  }
 0x1d1   :  { %2370 = vmatprep.subr.bf16.mxu0 %v3240_v27  ;;  %2452 = vmatprep.subr.bf16.mxu1 %v3243_v28  ;;  %v3294_v27 = vld [vmem:[#allocation8 + $0x284] ss:$16 sps:$4 sm:$0xff]   ;;  %v3297_v28 = vld [vmem:[#allocation8 + $0x28c] ss:$16 sps:$4 sm:$0xff]  }
 0x1d4   :  { %2371 = vmatpush1.bf16.msra.mxu0 %v3238_v29  ;;  %2453 = vmatpush1.bf16.msra.mxu1 %v3241_v30  ;;  %v3292_v29 = vld [vmem:[#allocation8 + $0x280] ss:$16 sps:$4 sm:$0xff]   ;;  %v3295_v30 = vld [vmem:[#allocation8 + $0x288] ss:$16 sps:$4 sm:$0xff]  }
 0x1d5   :  { %2372 = vmatprep.subr.bf16.mxu0 %v3246_v31  ;;  %2454 = vmatprep.subr.bf16.mxu1 %v3249_v7  ;;  %v3300_v31 = vld [vmem:[#allocation8 + $0x2a4] ss:$16 sps:$4 sm:$0xff]   ;;  %v3303_v7 = vld [vmem:[#allocation8 + $0x2ac] ss:$16 sps:$4 sm:$0xff]  }
 0x1d8   :  { %2373 = vmatpush1.bf16.msra.mxu0 %v3244_v32  ;;  %2455 = vmatpush1.bf16.msra.mxu1 %v3247_v33  ;;  %v3298_v32 = vld [vmem:[#allocation8 + $0x2a0] ss:$16 sps:$4 sm:$0xff]   ;;  %v3301_v33 = vld [vmem:[#allocation8 + $0x2a8] ss:$16 sps:$4 sm:$0xff]  }
 0x1d9   :  { %2374 = vmatprep.subr.bf16.mxu0 %v3252_v34  ;;  %2456 = vmatprep.subr.bf16.mxu1 %v3255_v36  ;;  %v3306_v34 = vld [vmem:[#allocation8 + $0x2c4] ss:$16 sps:$4 sm:$0xff]   ;;  %v3309_v36 = vld [vmem:[#allocation8 + $0x2cc] ss:$16 sps:$4 sm:$0xff]  }
 0x1dc   :  { %2375 = vmatpush1.bf16.msra.mxu0 %v3250_v37  ;;  %2457 = vmatpush1.bf16.msra.mxu1 %v3253_v38  ;;  %v3304_v37 = vld [vmem:[#allocation8 + $0x2c0] ss:$16 sps:$4 sm:$0xff]   ;;  %v3307_v38 = vld [vmem:[#allocation8 + $0x2c8] ss:$16 sps:$4 sm:$0xff]  }
 0x1dd   :  { %2376 = vmatprep.subr.bf16.mxu0 %v3258_v9  ;;  %2458 = vmatprep.subr.bf16.mxu1 %v3261_v39  ;;  %v3312_v9 = vld [vmem:[#allocation8 + $0x2e4] ss:$16 sps:$4 sm:$0xff]   ;;  %v3315_v39 = vld [vmem:[#allocation8 + $0x2ec] ss:$16 sps:$4 sm:$0xff]  }
 0x1e0   :  { %2377 = vmatpush1.bf16.msra.mxu0 %v3256_v40  ;;  %2459 = vmatpush1.bf16.msra.mxu1 %v3259_v41  ;;  %v3310_v40 = vld [vmem:[#allocation8 + $0x2e0] ss:$16 sps:$4 sm:$0xff]   ;;  %v3313_v41 = vld [vmem:[#allocation8 + $0x2e8] ss:$16 sps:$4 sm:$0xff]  }
 0x1e1   :  { %2378 = vmatprep.subr.bf16.mxu0 %v3264_v42  ;;  %2460 = vmatprep.subr.bf16.mxu1 %v3267_v43  ;;  %v3318_v42 = vld [vmem:[#allocation8 + $0x304] ss:$16 sps:$4 sm:$0xff]   ;;  %v3321_v43 = vld [vmem:[#allocation8 + $0x30c] ss:$16 sps:$4 sm:$0xff]  }
 0x1e4   :  { %2379 = vmatpush1.bf16.msra.mxu0 %v3262_v44  ;;  %2461 = vmatpush1.bf16.msra.mxu1 %v3265_v45  ;;  %v3316_v44 = vld [vmem:[#allocation8 + $0x300] ss:$16 sps:$4 sm:$0xff]   ;;  %v3319_v45 = vld [vmem:[#allocation8 + $0x308] ss:$16 sps:$4 sm:$0xff]  }
 0x1e5   :  { %2389 = vmatprep.subr.bf16.mxu0 %v3270_v46  ;;  %2471 = vmatprep.subr.bf16.mxu1 %v3273_v47  ;;  %v3324_v46 = vld [vmem:[#allocation8 + $0x324] ss:$16 sps:$4 sm:$0xff]   ;;  %v3327_v47 = vld [vmem:[#allocation8 + $0x32c] ss:$16 sps:$4 sm:$0xff]  }
 0x27a   :  { %v1453_v52 = vpop.f32.mrb[4].mxu0  ;;  %v3627_v53 = vpop.f32.mrb[4].mxu1 }
 0x27b   :  { %v2853_v54 = vadd.f32 %v1453_v52, %v721_v49  ;;  %v1455_v55 = vpop.f32.mrb[5].mxu0  ;;  %v1537_v56 = vpop.f32.mrb[5].mxu1  ;;  %v3322_v49 = vld [vmem:[#allocation8 + $0x320] ss:$16 sps:$4 sm:$0xff]   ;;  %v3333_v52 = vld [vmem:[#allocation8 + $0x34c] ss:$16 sps:$4 sm:$0xff]  }
 0x27c   :  { %v2854_v57 = vadd.f32 %v1455_v55, %v725_v50  ;;  %v2856_v58 = vadd.f32 %v1537_v56, %v733_v51  ;;  %v1457_v59 = vpop.f32.mrb[6].mxu0  ;;  %v1539_v60 = vpop.f32.mrb[6].mxu1  ;;  %v3325_v50 = vld [vmem:[#allocation8 + $0x328] ss:$16 sps:$4 sm:$0xff]   ;;  %v3330_v51 = vld [vmem:[#allocation8 + $0x344] ss:$16 sps:$4 sm:$0xff]  }
 0x27d   :  { %vm1542_vm4 = vcmp.gt.f32.partialorder %v2853_v54, 0.0  ;;  %v1546_v61 = vmul.f32 0.2, %v2853_v54  ;;  %v1458_v1 = vpop.f32.mrb[7].mxu0  ;;  %v1540_v2 = vpop.f32.mrb[7].mxu1 }
 0x27e   :  { %vm1543_vm5 = vcmp.gt.f32.partialorder %v2854_v57, 0.0  ;;  %v1547_v62 = vmul.f32 0.2, %v2854_v57  ;;  %vm1545_vm6 = vcmp.gt.f32.partialorder %v2856_v58, 0.0  ;;  %v1549_v63 = vmul.f32 0.2, %v2856_v58 }
 0x27f   :  { %v1550_v0 = vsel %vm1542_vm4, %v2853_v54, %v1546_v61  ;;  %v3328_v54 = vld [vmem:[#allocation8 + $0x340] ss:$16 sps:$4 sm:$0xff]   ;;  %v3331_v55 = vld [vmem:[#allocation8 + $0x348] ss:$16 sps:$4 sm:$0xff]   ;;  %v3336_v56 = vld [vmem:[#allocation8 + $0x364] ss:$16 sps:$4 sm:$0xff]   ;;  %v729_v2 = vrot.slane %v3619_v48, %v3611_v23 }
 0x280   :  { %v1551_v3 = vsel %vm1543_vm5, %v2854_v57, %v1547_v62  ;;  %v1553_v11 = vsel %vm1545_vm6, %v2856_v58, %v1549_v63  ;;  %v1554_v12 = vpack.c.bf16 %v1550_v0, %v1550_v0  ;;  %v3339_v57 = vld [vmem:[#allocation8 + $0x36c] ss:$16 sps:$4 sm:$0xff]   ;;  %v3334_v58 = vld [vmem:[#allocation8 + $0x360] ss:$16 sps:$4 sm:$0xff]   ;;  %v3337_v59 = vld [vmem:[#allocation8 + $0x368] ss:$16 sps:$4 sm:$0xff]  }
 0x281   :  { %v1555_v4 = vpack.c.bf16 %v1551_v3, %v1551_v3  ;;  %v1557_v15 = vpack.c.bf16 %v1553_v11, %v1553_v11  ;;  %v3342_v60 = vld [vmem:[#allocation8 + $0x384] ss:$16 sps:$4 sm:$0xff]   ;;  %v3345_v61 = vld [vmem:[#allocation8 + $0x38c] ss:$16 sps:$4 sm:$0xff]   ;;  %v3340_v62 = vld [vmem:[#allocation8 + $0x380] ss:$16 sps:$4 sm:$0xff]   ;;  %v2855_v11 = vadd.f32 %v3627_v53, %v729_v2 }
 0x282   :  { %v3343_v63 = vld [vmem:[#allocation8 + $0x388] ss:$16 sps:$4 sm:$0xff]   ;;  %v3348_v0 = vld [vmem:[#allocation8 + $0x3a4] ss:$16 sps:$4 sm:$0xff]   ;;  %v3351_v1 = vld [vmem:[#allocation8 + $0x3ac] ss:$16 sps:$4 sm:$0xff]  }
 0x283   :  { %2380 = vmatprep.mubr.bf16.mxu0 %v1555_v4  ;;  %2462 = vmatprep.mubr.bf16.mxu1 %v1555_v4  ;;  %v3346_v3 = vld [vmem:[#allocation8 + $0x3a0] ss:$16 sps:$4 sm:$0xff]   ;;  %v3349_v4 = vld [vmem:[#allocation8 + $0x3a8] ss:$16 sps:$4 sm:$0xff]   ;;  %vm1544_vm7 = vcmp.gt.f32.partialorder %v2855_v11, 0.0 }
 0x284   :  { %2381 = vmatmul.mubr.bf16.vlgmr.msra.gmra.mrb[8].mxu0 %v1554_v12  ;;  %2463 = vmatmul.mubr.bf16.vlgmr.msra.gmra.mrb[8].mxu1 %v1554_v12  ;;  %v3352_v12 = vld [vmem:[#allocation8 + $0x3c0] ss:$16 sps:$4 sm:$0xff]  }
 0x285   :  { %2390 = vmatpush1.bf16.msra.mxu0 %v3268_v5  ;;  %2472 = vmatpush1.bf16.msra.mxu1 %v3271_v6  ;;  %v3354_v5 = vld [vmem:[#allocation8 + $0x3c4] ss:$16 sps:$4 sm:$0xff]   ;;  %v3357_v6 = vld [vmem:[#allocation8 + $0x3cc] ss:$16 sps:$4 sm:$0xff]   ;;  %v3358_v48 = vld [vmem:[#allocation8 + $0x3e0] ss:$16 sps:$4 sm:$0xff]  }
 0x286   :  { %2421 = vmatprep.mubr.bf16.mxu0 %v1557_v15  ;;  %2503 = vmatprep.mubr.bf16.mxu1 %v1557_v15  ;;  %v3363_v15 = vld [vmem:[#allocation8 + $0x3ec] ss:$16 sps:$4 sm:$0xff]  }
 0x287   :  { %2391 = vmatprep.subr.bf16.mxu0 %v3276_v13  ;;  %2473 = vmatprep.subr.bf16.mxu1 %v3279_v14  ;;  %v3355_v13 = vld [vmem:[#allocation8 + $0x3c8] ss:$16 sps:$4 sm:$0xff]   ;;  %v3360_v14 = vld [vmem:[#allocation8 + $0x3e4] ss:$16 sps:$4 sm:$0xff]  }
 0x289   :  { %2392 = vmatpush1.bf16.msra.mxu0 %v3274_v16  ;;  %2474 = vmatpush1.bf16.msra.mxu1 %v3277_v17  ;;  %v1548_v16 = vmul.f32 0.2, %v2855_v11  ;;  %v3361_v17 = vld [vmem:[#allocation8 + $0x3e8] ss:$16 sps:$4 sm:$0xff]  }
 0x28a   :  { %2393 = vmatprep.subr.bf16.mxu0 %v3282_v18  ;;  %2475 = vmatprep.subr.bf16.mxu1 %v3285_v19  ;;  %v1686_v19 = vld [vmem:[%s3657_s6] sm:$0xf]  ;;  %s3452_s6 = scalar_lea.vmem %s2523_s28, 512 }
 0x28b   :  { %v1552_v18 = vsel %vm1544_vm7, %v2855_v11, %v1548_v16  ;;  %p3453_p4 = scmp.ne.s32.totalorder %s2523_s28, %s3452_s6  ;;  %p3458_p6 = scmp.lt.s32.totalorder %s3452_s6, %s3452_s6 }
 0x28c   :  { %v1556_v53 = vpack.c.bf16 %v1552_v18, %v1552_v18 }
 0x28d   :  { %2394 = vmatpush1.bf16.msra.mxu0 %v3280_v20  ;;  %2476 = vmatpush1.bf16.msra.mxu1 %v3283_v21  ;;  %v1691_v20 = vrot.slane %v1686_v19, %v3589_v8  ;;  %v1699_v21 = vrot.slane %v1686_v19, %v3611_v23  ;;  %p3459_p7 = por %p3458_p6, %p3457_p5 }
 0x28e   :  { %2395 = vmatprep.subr.bf16.mxu0 %v3288_v22  ;;  %2477 = vmatprep.subr.bf16.mxu1 %v3291_v24  ;;  %v1695_v22 = vrot.slane %v1686_v19, %v3597_v10  ;;  %v1703_v24 = vrot.slane %v1686_v19, %v3604_v35 }
 0x28f   :  { %p3460_p8 = pnand %p3459_p7, %p3453_p4 }
 0x291   :  { %2396 = vmatpush1.bf16.msra.mxu0 %v3286_v25  ;;  %2478 = vmatpush1.bf16.msra.mxu1 %v3289_v26 }
 0x292   :  { %2397 = vmatprep.subr.bf16.mxu0 %v3294_v27  ;;  %2479 = vmatprep.subr.bf16.mxu1 %v3297_v28 }
 0x295   :  { %2398 = vmatpush1.bf16.msra.mxu0 %v3292_v29  ;;  %2480 = vmatpush1.bf16.msra.mxu1 %v3295_v30 }
 0x296   :  { %2399 = vmatprep.subr.bf16.mxu0 %v3300_v31  ;;  %2481 = vmatprep.subr.bf16.mxu1 %v3303_v7 }
 0x299   :  { %2400 = vmatpush1.bf16.msra.mxu0 %v3298_v32  ;;  %2482 = vmatpush1.bf16.msra.mxu1 %v3301_v33 }
 0x29a   :  { %2401 = vmatprep.subr.bf16.mxu0 %v3306_v34  ;;  %2483 = vmatprep.subr.bf16.mxu1 %v3309_v36 }
 0x29d   :  { %2402 = vmatpush1.bf16.msra.mxu0 %v3304_v37  ;;  %2484 = vmatpush1.bf16.msra.mxu1 %v3307_v38 }
 0x29e   :  { %2403 = vmatprep.subr.bf16.mxu0 %v3312_v9  ;;  %2485 = vmatprep.subr.bf16.mxu1 %v3315_v39 }
 0x2a1   :  { %2404 = vmatpush1.bf16.msra.mxu0 %v3310_v40  ;;  %2486 = vmatpush1.bf16.msra.mxu1 %v3313_v41 }
 0x2a2   :  { %2405 = vmatprep.subr.bf16.mxu0 %v3318_v42  ;;  %2487 = vmatprep.subr.bf16.mxu1 %v3321_v43 }
 0x2a5   :  { %2406 = vmatpush1.bf16.msra.mxu0 %v3316_v44  ;;  %2488 = vmatpush1.bf16.msra.mxu1 %v3319_v45 }
 0x2a6   :  { %2407 = vmatprep.subr.bf16.mxu0 %v3324_v46  ;;  %2489 = vmatprep.subr.bf16.mxu1 %v3327_v47 }
 0x2a9   :  { %2408 = vmatpush1.bf16.msra.mxu0 %v3322_v49  ;;  %2490 = vmatpush1.bf16.msra.mxu1 %v3325_v50 }
 0x2aa   :  { %2409 = vmatprep.subr.bf16.mxu0 %v3330_v51  ;;  %2491 = vmatprep.subr.bf16.mxu1 %v3333_v52 }
 0x2ad   :  { %2410 = vmatpush1.bf16.msra.mxu0 %v3328_v54  ;;  %2492 = vmatpush1.bf16.msra.mxu1 %v3331_v55 }
 0x2ae   :  { %2411 = vmatprep.subr.bf16.mxu0 %v3336_v56  ;;  %2493 = vmatprep.subr.bf16.mxu1 %v3339_v57 }
 0x2b1   :  { %2412 = vmatpush1.bf16.msra.mxu0 %v3334_v58  ;;  %2494 = vmatpush1.bf16.msra.mxu1 %v3337_v59 }
 0x2b2   :  { %2413 = vmatprep.subr.bf16.mxu0 %v3342_v60  ;;  %2495 = vmatprep.subr.bf16.mxu1 %v3345_v61 }
 0x2b5   :  { %2414 = vmatpush1.bf16.msra.mxu0 %v3340_v62  ;;  %2496 = vmatpush1.bf16.msra.mxu1 %v3343_v63 }
 0x2b6   :  { %2415 = vmatprep.subr.bf16.mxu0 %v3348_v0  ;;  %2497 = vmatprep.subr.bf16.mxu1 %v3351_v1 }
 0x2b9   :  { %2416 = vmatpush1.bf16.msra.mxu0 %v3346_v3  ;;  %2498 = vmatpush1.bf16.msra.mxu1 %v3349_v4 }
 0x2ba   :  { %2417 = vmatprep.subr.bf16.mxu0 %v3354_v5  ;;  %2499 = vmatprep.subr.bf16.mxu1 %v3357_v6 }
 0x2bd   :  { %2418 = vmatpush1.bf16.msra.mxu0 %v3352_v12  ;;  %2500 = vmatpush1.bf16.msra.mxu1 %v3355_v13 }
 0x2be   :  { %2419 = vmatprep.subr.bf16.mxu0 %v3360_v14  ;;  %2501 = vmatprep.subr.bf16.mxu1 %v3363_v15 }
 0x2c1   :  { %2420 = vmatpush1.bf16.msra.mxu0 %v3358_v48  ;;  %2502 = vmatpush1.bf16.msra.mxu1 %v3361_v17 }
 0x2c4   :  { %2422 = vmatmul.mubr.bf16.vlgmr.msra.gmra.mrb[8].mxu0 %v1556_v53  ;;  %2504 = vmatmul.mubr.bf16.vlgmr.msra.gmra.mrb[8].mxu1 %v1556_v53 }
 0x397   :  { %v2423_v25 = vpop.f32.mrb[8].mxu0  ;;  %v2505_v26 = vpop.f32.mrb[8].mxu1 }
 0x398   :  { %v2857_v27 = vadd.f32 %v2423_v25, %v1691_v20  ;;  %v2859_v28 = vadd.f32 %v2505_v26, %v1699_v21  ;;  %v2425_v29 = vpop.f32.mrb[9].mxu0  ;;  %v2507_v30 = vpop.f32.mrb[9].mxu1 }
 0x399   :  { %v2858_v31 = vadd.f32 %v2425_v29, %v1695_v22  ;;  %v2860_v7 = vadd.f32 %v2507_v30, %v1703_v24  ;;  %v2427_v32 = vpop.f32.mrb[10].mxu0  ;;  %v2509_v33 = vpop.f32.mrb[10].mxu1 }
 0x39a   :  { %2512 = vst [vmem:[#allocation10] sm:$0xff] %v2857_v27  ;;  %2514 = vst [vmem:[#allocation10 + $0x10] sm:$0xff] %v2859_v28  ;;  %v2428_v8 = vpop.f32.mrb[11].mxu0  ;;  %v2510_v23 = vpop.f32.mrb[11].mxu1 }
 0x39b   :  { %2513 = vst [vmem:[#allocation10 + $0x8] sm:$0xff] %v2858_v31  ;;  %2515 = vst [vmem:[#allocation10 + $0x18] sm:$0xff] %v2860_v7 }
 0x39c   :  { %3463 = shalt.err (!%p3460_p8)
}
 0x39d   :  { %s3464_s8 = scalar_lea.hbm %s3658_s7, 512 }
 0x39e   :  { %p3465_p9 = scmp.ne.s32.totalorder %s3658_s7, %s3464_s8  ;;  %p3468_p10 = scmp.lt.u32.totalorder %s3464_s8, %s3658_s7 }
 0x3a0   :  { %p3470_p11 = pnand %p3468_p10, %p3465_p9 }
 0x3a2   :  { %3473 = shalt.err (!%p3470_p11)
}
 0x3a3   :  { %2525 = dma.vmem_to_hbm [thread:$0]  %s2523_s28, 512, %s3658_s7, [#allocation4]  }
 0x3a4   :  { %3480 = dma.done.wait [#allocation4], 512  }
 0x3a5   :  { %3481 = vsyncadd [#allocation4], 4294966784 }
 0x3a6   :  { %2529 = vsyncpa [#allocation3], 1 }
 0x3a7   :  { %2530 = vsyncpa [#allocation6], 1 }
 0x3a8   :  { %2531 = vsyncpa [#allocation9], 1 }
 0x3a9   :  { %2532 = vsyncpa [#allocation4], 1 }

</bundles_post_ra>
